<compile_context>
chip_gen: v7x
topology: tpu7x:2x2x1
jax: 0.10.0
libtpu: 0.0.40
codegen_flags: <defaults>
</compile_context>

<pallas_src>
import functools

import jax
import jax.numpy as jnp
from jax.experimental import pallas as pl
from jax.experimental.pallas import tpu as pltpu


# -----------------------------------------------------------------------------
# Fused encoder kernel (no grid: whole problem fits comfortably in VMEM).
# -----------------------------------------------------------------------------
def region_encoder_kernel(conv_w_ref, conv_b_ref,                     # SMEM (1,1)
                          x_ref, w1_ref, b1_ref, w2_ref, b2_ref,      # embedder
                          lnw_ref, lnb_ref, wqkv_ref, bqkv_ref,       # stacked layers
                          wm_ref, bm_ref,
                          out_ref, attn_ref,
                          *, num_layers, num_heads, head_size, batch, seq):
    N = batch * seq
    M = seq
    hs = head_size
    E = w2_ref.shape[1]

    # ---- RegionEmbedder: 1x1 conv (scale + bias) -> Linear -> ReLU -> Linear
    x = x_ref[...]                                           # (N, Din)
    xc = x * conv_w_ref[0, 0] + conv_b_ref[0, 0]
    h = jnp.dot(xc, w1_ref[...], preferred_element_type=jnp.float32) + b1_ref[...]
    h = jnp.maximum(h, 0.0)
    x_reg = jnp.dot(h, w2_ref[...], preferred_element_type=jnp.float32) + b2_ref[...]

    # ---- diagonal -inf bias (torch.eye mask), hoisted out of the layer loop.
    # NOTE: if M == 1 every score in a row is masked and softmax yields NaN,
    # exactly as the PyTorch reference does. Fine for M >= 2.
    rows = jax.lax.broadcasted_iota(jnp.int32, (M, M), 0)
    cols = jax.lax.broadcasted_iota(jnp.int32, (M, M), 1)
    diag_bias = jnp.where(rows == cols, -jnp.inf, 0.0).astype(jnp.float32)

    scale = 1.0 / (hs ** 0.5)

    x_in = x_reg
    for l in range(num_layers):                              # static, small L
        # LayerNorm (eps = 1e-5, biased variance, matching nn.LayerNorm)
        mean = jnp.mean(x_in, axis=-1, keepdims=True)
        var = jnp.mean((x_in - mean) ** 2, axis=-1, keepdims=True)
        norm = (x_in - mean) * jax.lax.rsqrt(var + 1e-5) * lnw_ref[l] + lnb_ref[l]

        # fused QKV projection: one (N, E) x (E, 3E) matmul
        qkv = jnp.dot(norm, wqkv_ref[l],
                      preferred_element_type=jnp.float32) + bqkv_ref[l]   # (N, 3E)

        wm_l = wm_ref[l]                                     # (E, E)
        new_x = x_in + bm_ref[l]                             # residual + out-proj bias

        for hd in range(num_heads):                          # static, small H
            # per-head q/k/v, batched over B via 3D einsum (no 4D transposes)
            q_h = qkv[:, hd * hs:(hd + 1) * hs].reshape(batch, M, hs)
            k_h = qkv[:, E + hd * hs:E + (hd + 1) * hs].reshape(batch, M, hs)
            v_h = qkv[:, 2 * E + hd * hs:2 * E + (hd + 1) * hs].reshape(batch, M, hs)

            s = jnp.einsum('bmd,bnd->bmn', q_h, k_h,
                           preferred_element_type=jnp.float32) * scale + diag_bias
            s_max = jnp.max(s, axis=-1, keepdims=True)
            e = jnp.exp(s - s_max)
            w = e * pl.reciprocal(jnp.sum(e, axis=-1, keepdims=True), approx=True)

            # lane-dense packed attention output:
            #   row = b*M + m , col = (l*H + hd)*M + n
            c0 = (l * num_heads + hd) * M
            attn_ref[:, c0:c0 + M] = w.reshape(N, M)

            ctx_h = jnp.einsum('bmn,bnd->bmd', w, v_h,
                               preferred_element_type=jnp.float32).reshape(N, hs)
            # fold this head's output-projection contribution (avoids head concat)
            new_x = new_x + jnp.dot(ctx_h, wm_l[hd * hs:(hd + 1) * hs, :],
                                    preferred_element_type=jnp.float32)

        x_in = new_x

    # final residual of the RegionEncoder, fused into the kernel
    out_ref[...] = x_reg + x_in


# -----------------------------------------------------------------------------
# Wrapper
# -----------------------------------------------------------------------------
def region_encoder_forward(x, params, num_heads):
    B, M, Din = x.shape
    emb = params["embedder"]
    lay = params["layers_packed"]
    L = lay["wqkv"].shape[0]
    E = emb["w2"].shape[1]
    hs = E // num_heads
    N = B * M

    kern = functools.partial(
        region_encoder_kernel,
        num_layers=L, num_heads=num_heads, head_size=hs, batch=B, seq=M)

    smem = pl.BlockSpec(memory_space=pltpu.MemorySpace.SMEM)
    vmem = pl.BlockSpec(memory_space=pltpu.MemorySpace.VMEM)

    out_flat, attn_packed = pl.pallas_call(
        kern,
        out_shape=(
            jax.ShapeDtypeStruct((N, E), jnp.float32),
            jax.ShapeDtypeStruct((N, L * num_heads * M), jnp.float32),
        ),
        in_specs=[smem, smem] + [vmem] * 11,
        out_specs=(vmem, vmem),
    )(
        emb["conv_w"], emb["conv_b"], x.reshape(N, Din),
        emb["w1"], emb["b1"], emb["w2"], emb["b2"],
        lay["ln_w"], lay["ln_b"], lay["wqkv"], lay["bqkv"], lay["wm"], lay["bm"],
    )

    out = out_flat.reshape(B, M, E)
    # unpack lane-dense attention slab -> (B, L, H, M, M)  (== torch.stack(...).permute(1,0,2,3,4))
    attn = attn_packed.reshape(B, M, L, num_heads, M).transpose(0, 2, 3, 1, 4)
    return out, attn


# -----------------------------------------------------------------------------
# Deterministic parameter construction (same key structure as before) + packing
# -----------------------------------------------------------------------------
def init_params(key, input_dim, hidden_dim, embd_dim, num_layers):
    keys = jax.random.split(key, 8 + num_layers)

    def lin(k, fan_in, fan_out):
        s = 1.0 / (fan_in ** 0.5)
        kw, kb = jax.random.split(k)
        w = jax.random.uniform(kw, (fan_in, fan_out), jnp.float32, -s, s)
        b = jax.random.uniform(kb, (1, fan_out), jnp.float32, -s, s)
        return w, b

    w1, b1 = lin(keys[0], input_dim, hidden_dim)
    w2, b2 = lin(keys[1], hidden_dim, embd_dim)
    embedder = {
        "conv_w": jax.random.uniform(keys[2], (1, 1), jnp.float32, -1.0, 1.0),
        "conv_b": jax.random.uniform(keys[3], (1, 1), jnp.float32, -1.0, 1.0),
        "w1": w1, "b1": b1, "w2": w2, "b2": b2,
    }

    layers = []
    for i in range(num_layers):
        lk = jax.random.split(keys[8 + i], 4)
        wq, bq = lin(lk[0], embd_dim, embd_dim)
        wk, bk = lin(lk[1], embd_dim, embd_dim)
        wv, bv = lin(lk[2], embd_dim, embd_dim)
        wm, bm = lin(lk[3], embd_dim, embd_dim)
        layers.append({
            "ln_w": jnp.ones((1, embd_dim), jnp.float32),
            "ln_b": jnp.zeros((1, embd_dim), jnp.float32),
            "wq": wq, "bq": bq, "wk": wk, "bk": bk,
            "wv": wv, "bv": bv, "wm": wm, "bm": bm,
        })
    return {"embedder": embedder, "layers": layers}


def pack_layer_params(layers):
    """One-time packing: stack layers and fuse Q/K/V weights into (L, E, 3E)."""
    return {
        "ln_w": jnp.stack([p["ln_w"] for p in layers]),                 # (L, 1, E)
        "ln_b": jnp.stack([p["ln_b"] for p in layers]),                 # (L, 1, E)
        "wqkv": jnp.stack([jnp.concatenate([p["wq"], p["wk"], p["wv"]], axis=1)
                           for p in layers]),                           # (L, E, 3E)
        "bqkv": jnp.stack([jnp.concatenate([p["bq"], p["bk"], p["bv"]], axis=1)
                           for p in layers]),                           # (L, 1, 3E)
        "wm": jnp.stack([p["wm"] for p in layers]),                     # (L, E, E)
        "bm": jnp.stack([p["bm"] for p in layers]),                     # (L, 1, E)
    }


if __name__ == "__main__":
    B, M = 2, 8
    input_dim, hidden_dim, embd_dim = 16, 32, 32
    num_heads, num_layers = 4, 2

    key = jax.random.PRNGKey(0)
    kx, kp = jax.random.split(key)
    x = jax.random.normal(kx, (B, M, input_dim), jnp.float32)
    raw = init_params(kp, input_dim, hidden_dim, embd_dim, num_layers)
    params = {"embedder": raw["embedder"],
              "layers_packed": pack_layer_params(raw["layers"])}

    fwd = jax.jit(functools.partial(region_encoder_forward, num_heads=num_heads))
    out, attn = fwd(x, params)
    out = jax.block_until_ready(out)
    attn = jax.block_until_ready(attn)

    assert out.shape == (B, M, embd_dim)
    assert attn.shape == (B, num_layers, num_heads, M, M)
    assert bool(jnp.all(jnp.isfinite(out)))
    assert bool(jnp.all(jnp.isfinite(attn)))
    # softmax rows sum to ~1 (loose tol: approx EUP reciprocal)
    assert bool(jnp.allclose(jnp.sum(attn, axis=-1), 1.0, atol=1e-2))
    print("KERNEL_OK")
</pallas_src>

<mosaic_0001>
module attributes {stable_mosaic.version = 11 : i64} {
  func.func @region_encoder_kernel(%arg0: memref<1x1xf32, #tpu.memory_space<smem>>, %arg1: memref<1x1xf32, #tpu.memory_space<smem>>, %arg2: memref<16x16xf32, #tpu.memory_space<vmem>>, %arg3: memref<16x32xf32, #tpu.memory_space<vmem>>, %arg4: memref<1x32xf32, #tpu.memory_space<vmem>>, %arg5: memref<32x32xf32, #tpu.memory_space<vmem>>, %arg6: memref<1x32xf32, #tpu.memory_space<vmem>>, %arg7: memref<2x1x32xf32, #tpu.memory_space<vmem>>, %arg8: memref<2x1x32xf32, #tpu.memory_space<vmem>>, %arg9: memref<2x32x96xf32, #tpu.memory_space<vmem>>, %arg10: memref<2x1x96xf32, #tpu.memory_space<vmem>>, %arg11: memref<2x32x32xf32, #tpu.memory_space<vmem>>, %arg12: memref<2x1x32xf32, #tpu.memory_space<vmem>>, %arg13: memref<16x32xf32, #tpu.memory_space<vmem>>, %arg14: memref<16x64xf32, #tpu.memory_space<vmem>>) attributes {dimension_semantics = [], scalar_prefetch = 0 : i64, scratch_operands = 0 : i64, tpu.core_type = #tpu.core_type<tc>} {
    %c0 = arith.constant 0 : index
    %c0_0 = arith.constant 0 : index
    %0 = vector.load %arg2[%c0, %c0_0] : memref<16x16xf32, #tpu.memory_space<vmem>>, vector<16x16xf32>
    %c0_1 = arith.constant 0 : index
    %c0_2 = arith.constant 0 : index
    %1 = memref.load %arg0[%c0_1, %c0_2] : memref<1x1xf32, #tpu.memory_space<smem>>
    %2 = vector.broadcast %1 : f32 to vector<16x16xf32>
    %3 = arith.mulf %0, %2 : vector<16x16xf32>
    %c0_3 = arith.constant 0 : index
    %c0_4 = arith.constant 0 : index
    %4 = memref.load %arg1[%c0_3, %c0_4] : memref<1x1xf32, #tpu.memory_space<smem>>
    %5 = vector.broadcast %4 : f32 to vector<16x16xf32>
    %6 = arith.addf %3, %5 : vector<16x16xf32>
    %c0_5 = arith.constant 0 : index
    %c0_6 = arith.constant 0 : index
    %7 = vector.load %arg3[%c0_5, %c0_6] : memref<16x32xf32, #tpu.memory_space<vmem>>, vector<16x32xf32>
    %cst = arith.constant dense<0.000000e+00> : vector<16x32xf32>
    %8 = tpu.matmul %6, %7, %cst {dimension_numbers = #tpu.dot_dimension_numbers<[1], [0], [0], [1], [0, 0, 1, 1], [], []>} : vector<16x16xf32>, vector<16x32xf32>, vector<16x32xf32> -> vector<16x32xf32>
    %c0_7 = arith.constant 0 : index
    %c0_8 = arith.constant 0 : index
    %9 = vector.load %arg4[%c0_7, %c0_8] : memref<1x32xf32, #tpu.memory_space<vmem>>, vector<1x32xf32>
    %10 = vector.broadcast %9 : vector<1x32xf32> to vector<16x32xf32>
    %11 = arith.addf %8, %10 : vector<16x32xf32>
    %cst_9 = arith.constant 0.000000e+00 : f32
    %12 = vector.broadcast %cst_9 : f32 to vector<16x32xf32>
    %13 = arith.maximumf %11, %12 : vector<16x32xf32>
    %c0_10 = arith.constant 0 : index
    %c0_11 = arith.constant 0 : index
    %14 = vector.load %arg5[%c0_10, %c0_11] : memref<32x32xf32, #tpu.memory_space<vmem>>, vector<32x32xf32>
    %cst_12 = arith.constant dense<0.000000e+00> : vector<16x32xf32>
    %15 = tpu.matmul %13, %14, %cst_12 {dimension_numbers = #tpu.dot_dimension_numbers<[1], [0], [0], [1], [0, 0, 1, 1], [], []>} : vector<16x32xf32>, vector<32x32xf32>, vector<16x32xf32> -> vector<16x32xf32>
    %c0_13 = arith.constant 0 : index
    %c0_14 = arith.constant 0 : index
    %16 = vector.load %arg6[%c0_13, %c0_14] : memref<1x32xf32, #tpu.memory_space<vmem>>, vector<1x32xf32>
    %17 = vector.broadcast %16 : vector<1x32xf32> to vector<16x32xf32>
    %18 = arith.addf %15, %17 : vector<16x32xf32>
    %19 = tpu.iota {dimensions = array<i32: 0>} : vector<8x8xi32>
    %20 = tpu.iota {dimensions = array<i32: 1>} : vector<8x8xi32>
    %21 = arith.cmpi eq, %19, %20 : vector<8x8xi32>
    %cst_15 = arith.constant 0xFF800000 : f32
    %cst_16 = arith.constant 0.000000e+00 : f32
    %22 = vector.broadcast %cst_15 : f32 to vector<8x8xf32>
    %23 = vector.broadcast %cst_16 : f32 to vector<8x8xf32>
    %24 = arith.select %21, %22, %23 : vector<8x8xi1>, vector<8x8xf32>
    %cst_17 = arith.constant dense<0.000000e+00> : vector<16xf32>
    %25 = vector.multi_reduction <add>, %18, %cst_17 [1] : vector<16x32xf32> to vector<16xf32>
    %26 = vector.shape_cast %25 : vector<16xf32> to vector<16x1xf32>
    %cst_18 = arith.constant 3.200000e+01 : f32
    %27 = vector.broadcast %cst_18 : f32 to vector<16x1xf32>
    %28 = arith.divf %26, %27 : vector<16x1xf32>
    %29 = vector.broadcast %28 : vector<16x1xf32> to vector<16x32xf32>
    %30 = arith.subf %18, %29 : vector<16x32xf32>
    %31 = arith.mulf %30, %30 : vector<16x32xf32>
    %cst_19 = arith.constant dense<0.000000e+00> : vector<16xf32>
    %32 = vector.multi_reduction <add>, %31, %cst_19 [1] : vector<16x32xf32> to vector<16xf32>
    %33 = vector.shape_cast %32 : vector<16xf32> to vector<16x1xf32>
    %cst_20 = arith.constant 3.200000e+01 : f32
    %34 = vector.broadcast %cst_20 : f32 to vector<16x1xf32>
    %35 = arith.divf %33, %34 : vector<16x1xf32>
    %36 = vector.broadcast %28 : vector<16x1xf32> to vector<16x32xf32>
    %37 = arith.subf %18, %36 : vector<16x32xf32>
    %cst_21 = arith.constant 9.99999974E-6 : f32
    %38 = vector.broadcast %cst_21 : f32 to vector<16x1xf32>
    %39 = arith.addf %35, %38 : vector<16x1xf32>
    %40 = math.rsqrt %39 : vector<16x1xf32>
    %41 = vector.broadcast %40 : vector<16x1xf32> to vector<16x32xf32>
    %42 = arith.mulf %37, %41 : vector<16x32xf32>
    %c0_22 = arith.constant 0 : index
    %c0_23 = arith.constant 0 : index
    %c0_24 = arith.constant 0 : index
    %43 = vector.load %arg7[%c0_22, %c0_23, %c0_24] : memref<2x1x32xf32, #tpu.memory_space<vmem>>, vector<1x1x32xf32>
    %44 = vector.shape_cast %43 : vector<1x1x32xf32> to vector<1x32xf32>
    %45 = vector.broadcast %44 : vector<1x32xf32> to vector<16x32xf32>
    %46 = arith.mulf %42, %45 : vector<16x32xf32>
    %c0_25 = arith.constant 0 : index
    %c0_26 = arith.constant 0 : index
    %c0_27 = arith.constant 0 : index
    %47 = vector.load %arg8[%c0_25, %c0_26, %c0_27] : memref<2x1x32xf32, #tpu.memory_space<vmem>>, vector<1x1x32xf32>
    %48 = vector.shape_cast %47 : vector<1x1x32xf32> to vector<1x32xf32>
    %49 = vector.broadcast %48 : vector<1x32xf32> to vector<16x32xf32>
    %50 = arith.addf %46, %49 : vector<16x32xf32>
    %c0_28 = arith.constant 0 : index
    %c0_29 = arith.constant 0 : index
    %c0_30 = arith.constant 0 : index
    %51 = vector.load %arg9[%c0_28, %c0_29, %c0_30] : memref<2x32x96xf32, #tpu.memory_space<vmem>>, vector<1x32x96xf32>
    %52 = vector.shape_cast %51 : vector<1x32x96xf32> to vector<32x96xf32>
    %cst_31 = arith.constant dense<0.000000e+00> : vector<16x96xf32>
    %53 = tpu.matmul %50, %52, %cst_31 {dimension_numbers = #tpu.dot_dimension_numbers<[1], [0], [0], [1], [0, 0, 1, 1], [], []>} : vector<16x32xf32>, vector<32x96xf32>, vector<16x96xf32> -> vector<16x96xf32>
    %c0_32 = arith.constant 0 : index
    %c0_33 = arith.constant 0 : index
    %c0_34 = arith.constant 0 : index
    %54 = vector.load %arg10[%c0_32, %c0_33, %c0_34] : memref<2x1x96xf32, #tpu.memory_space<vmem>>, vector<1x1x96xf32>
    %55 = vector.shape_cast %54 : vector<1x1x96xf32> to vector<1x96xf32>
    %56 = vector.broadcast %55 : vector<1x96xf32> to vector<16x96xf32>
    %57 = arith.addf %53, %56 : vector<16x96xf32>
    %c0_35 = arith.constant 0 : index
    %c0_36 = arith.constant 0 : index
    %c0_37 = arith.constant 0 : index
    %58 = vector.load %arg11[%c0_35, %c0_36, %c0_37] : memref<2x32x32xf32, #tpu.memory_space<vmem>>, vector<1x32x32xf32>
    %59 = vector.shape_cast %58 : vector<1x32x32xf32> to vector<32x32xf32>
    %c0_38 = arith.constant 0 : index
    %c0_39 = arith.constant 0 : index
    %c0_40 = arith.constant 0 : index
    %60 = vector.load %arg12[%c0_38, %c0_39, %c0_40] : memref<2x1x32xf32, #tpu.memory_space<vmem>>, vector<1x1x32xf32>
    %61 = vector.shape_cast %60 : vector<1x1x32xf32> to vector<1x32xf32>
    %62 = vector.broadcast %61 : vector<1x32xf32> to vector<16x32xf32>
    %63 = arith.addf %18, %62 : vector<16x32xf32>
    %64 = vector.extract_strided_slice %57 {offsets = [0, 0], sizes = [16, 8], strides = [1, 1]} : vector<16x96xf32> to vector<16x8xf32>
    %65 = vector.shape_cast %64 : vector<16x8xf32> to vector<2x8x8xf32>
    %66 = vector.extract_strided_slice %57 {offsets = [0, 32], sizes = [16, 8], strides = [1, 1]} : vector<16x96xf32> to vector<16x8xf32>
    %67 = vector.shape_cast %66 : vector<16x8xf32> to vector<2x8x8xf32>
    %68 = vector.extract_strided_slice %57 {offsets = [0, 64], sizes = [16, 8], strides = [1, 1]} : vector<16x96xf32> to vector<16x8xf32>
    %69 = vector.shape_cast %68 : vector<16x8xf32> to vector<2x8x8xf32>
    "tpu.trace_start"() <{level = 10 : i32, message = "bmd,bnd->bmn"}> : () -> ()
    %cst_41 = arith.constant dense<0.000000e+00> : vector<2x8x8xf32>
    %70 = tpu.matmul %65, %67, %cst_41 {dimension_numbers = #tpu.dot_dimension_numbers<[2], [2], [1], [1], [0, 0, 0, 1, 1, 1], [0], [0]>} : vector<2x8x8xf32>, vector<2x8x8xf32>, vector<2x8x8xf32> -> vector<2x8x8xf32>
    "tpu.trace_stop"() : () -> ()
    %cst_42 = arith.constant 0.353553385 : f32
    %71 = vector.broadcast %cst_42 : f32 to vector<2x8x8xf32>
    %72 = arith.mulf %70, %71 : vector<2x8x8xf32>
    %73 = vector.shape_cast %24 : vector<8x8xf32> to vector<1x8x8xf32>
    %74 = vector.broadcast %73 : vector<1x8x8xf32> to vector<2x8x8xf32>
    %75 = arith.addf %72, %74 : vector<2x8x8xf32>
    %cst_43 = arith.constant dense<0xFF800000> : vector<2x8xf32>
    %76 = vector.multi_reduction <maximumf>, %75, %cst_43 [2] : vector<2x8x8xf32> to vector<2x8xf32>
    %77 = vector.shape_cast %76 : vector<2x8xf32> to vector<2x8x1xf32>
    %78 = vector.broadcast %77 : vector<2x8x1xf32> to vector<2x8x8xf32>
    %79 = arith.subf %75, %78 : vector<2x8x8xf32>
    %80 = math.exp %79 : vector<2x8x8xf32>
    %cst_44 = arith.constant dense<0.000000e+00> : vector<2x8xf32>
    %81 = vector.multi_reduction <add>, %80, %cst_44 [2] : vector<2x8x8xf32> to vector<2x8xf32>
    %82 = vector.shape_cast %81 : vector<2x8xf32> to vector<2x8x1xf32>
    %83 = tpu.reciprocal %82 {approx = true} : vector<2x8x1xf32> -> vector<2x8x1xf32>
    %84 = vector.broadcast %83 : vector<2x8x1xf32> to vector<2x8x8xf32>
    %85 = arith.mulf %80, %84 : vector<2x8x8xf32>
    %86 = vector.shape_cast %85 : vector<2x8x8xf32> to vector<16x8xf32>
    %c0_45 = arith.constant 0 : index
    %c0_46 = arith.constant 0 : index
    %87 = vector.load %arg14[%c0_45, %c0_46] : memref<16x64xf32, #tpu.memory_space<vmem>>, vector<16x8xf32>
    tpu.vector_store %arg14[%c0_45, %c0_46], %86 {strides = array<i32>} : memref<16x64xf32, #tpu.memory_space<vmem>>, vector<16x8xf32>,
    "tpu.trace_start"() <{level = 10 : i32, message = "bmn,bnd->bmd"}> : () -> ()
    %cst_47 = arith.constant dense<0.000000e+00> : vector<2x8x8xf32>
    %88 = tpu.matmul %85, %69, %cst_47 {dimension_numbers = #tpu.dot_dimension_numbers<[2], [1], [1], [2], [0, 0, 0, 1, 1, 2], [0], [0]>} : vector<2x8x8xf32>, vector<2x8x8xf32>, vector<2x8x8xf32> -> vector<2x8x8xf32>
    "tpu.trace_stop"() : () -> ()
    %89 = vector.shape_cast %88 : vector<2x8x8xf32> to vector<16x8xf32>
    %90 = vector.extract_strided_slice %59 {offsets = [0, 0], sizes = [8, 32], strides = [1, 1]} : vector<32x32xf32> to vector<8x32xf32>
    %cst_48 = arith.constant dense<0.000000e+00> : vector<16x32xf32>
    %91 = tpu.matmul %89, %90, %cst_48 {dimension_numbers = #tpu.dot_dimension_numbers<[1], [0], [0], [1], [0, 0, 1, 1], [], []>} : vector<16x8xf32>, vector<8x32xf32>, vector<16x32xf32> -> vector<16x32xf32>
    %92 = arith.addf %63, %91 : vector<16x32xf32>
    %93 = vector.extract_strided_slice %57 {offsets = [0, 8], sizes = [16, 8], strides = [1, 1]} : vector<16x96xf32> to vector<16x8xf32>
    %94 = vector.shape_cast %93 : vector<16x8xf32> to vector<2x8x8xf32>
    %95 = vector.extract_strided_slice %57 {offsets = [0, 40], sizes = [16, 8], strides = [1, 1]} : vector<16x96xf32> to vector<16x8xf32>
    %96 = vector.shape_cast %95 : vector<16x8xf32> to vector<2x8x8xf32>
    %97 = vector.extract_strided_slice %57 {offsets = [0, 72], sizes = [16, 8], strides = [1, 1]} : vector<16x96xf32> to vector<16x8xf32>
    %98 = vector.shape_cast %97 : vector<16x8xf32> to vector<2x8x8xf32>
    "tpu.trace_start"() <{level = 10 : i32, message = "bmd,bnd->bmn"}> : () -> ()
    %cst_49 = arith.constant dense<0.000000e+00> : vector<2x8x8xf32>
    %99 = tpu.matmul %94, %96, %cst_49 {dimension_numbers = #tpu.dot_dimension_numbers<[2], [2], [1], [1], [0, 0, 0, 1, 1, 1], [0], [0]>} : vector<2x8x8xf32>, vector<2x8x8xf32>, vector<2x8x8xf32> -> vector<2x8x8xf32>
    "tpu.trace_stop"() : () -> ()
    %cst_50 = arith.constant 0.353553385 : f32
    %100 = vector.broadcast %cst_50 : f32 to vector<2x8x8xf32>
    %101 = arith.mulf %99, %100 : vector<2x8x8xf32>
    %102 = vector.shape_cast %24 : vector<8x8xf32> to vector<1x8x8xf32>
    %103 = vector.broadcast %102 : vector<1x8x8xf32> to vector<2x8x8xf32>
    %104 = arith.addf %101, %103 : vector<2x8x8xf32>
    %cst_51 = arith.constant dense<0xFF800000> : vector<2x8xf32>
    %105 = vector.multi_reduction <maximumf>, %104, %cst_51 [2] : vector<2x8x8xf32> to vector<2x8xf32>
    %106 = vector.shape_cast %105 : vector<2x8xf32> to vector<2x8x1xf32>
    %107 = vector.broadcast %106 : vector<2x8x1xf32> to vector<2x8x8xf32>
    %108 = arith.subf %104, %107 : vector<2x8x8xf32>
    %109 = math.exp %108 : vector<2x8x8xf32>
    %cst_52 = arith.constant dense<0.000000e+00> : vector<2x8xf32>
    %110 = vector.multi_reduction <add>, %109, %cst_52 [2] : vector<2x8x8xf32> to vector<2x8xf32>
    %111 = vector.shape_cast %110 : vector<2x8xf32> to vector<2x8x1xf32>
    %112 = tpu.reciprocal %111 {approx = true} : vector<2x8x1xf32> -> vector<2x8x1xf32>
    %113 = vector.broadcast %112 : vector<2x8x1xf32> to vector<2x8x8xf32>
    %114 = arith.mulf %109, %113 : vector<2x8x8xf32>
    %115 = vector.shape_cast %114 : vector<2x8x8xf32> to vector<16x8xf32>
    %c0_53 = arith.constant 0 : index
    %c8 = arith.constant 8 : index
    %116 = vector.load %arg14[%c0_53, %c8] : memref<16x64xf32, #tpu.memory_space<vmem>>, vector<16x8xf32>
    tpu.vector_store %arg14[%c0_53, %c8], %115 {strides = array<i32>} : memref<16x64xf32, #tpu.memory_space<vmem>>, vector<16x8xf32>,
    "tpu.trace_start"() <{level = 10 : i32, message = "bmn,bnd->bmd"}> : () -> ()
    %cst_54 = arith.constant dense<0.000000e+00> : vector<2x8x8xf32>
    %117 = tpu.matmul %114, %98, %cst_54 {dimension_numbers = #tpu.dot_dimension_numbers<[2], [1], [1], [2], [0, 0, 0, 1, 1, 2], [0], [0]>} : vector<2x8x8xf32>, vector<2x8x8xf32>, vector<2x8x8xf32> -> vector<2x8x8xf32>
    "tpu.trace_stop"() : () -> ()
    %118 = vector.shape_cast %117 : vector<2x8x8xf32> to vector<16x8xf32>
    %119 = vector.extract_strided_slice %59 {offsets = [8, 0], sizes = [8, 32], strides = [1, 1]} : vector<32x32xf32> to vector<8x32xf32>
    %cst_55 = arith.constant dense<0.000000e+00> : vector<16x32xf32>
    %120 = tpu.matmul %118, %119, %cst_55 {dimension_numbers = #tpu.dot_dimension_numbers<[1], [0], [0], [1], [0, 0, 1, 1], [], []>} : vector<16x8xf32>, vector<8x32xf32>, vector<16x32xf32> -> vector<16x32xf32>
    %121 = arith.addf %92, %120 : vector<16x32xf32>
    %122 = vector.extract_strided_slice %57 {offsets = [0, 16], sizes = [16, 8], strides = [1, 1]} : vector<16x96xf32> to vector<16x8xf32>
    %123 = vector.shape_cast %122 : vector<16x8xf32> to vector<2x8x8xf32>
    %124 = vector.extract_strided_slice %57 {offsets = [0, 48], sizes = [16, 8], strides = [1, 1]} : vector<16x96xf32> to vector<16x8xf32>
    %125 = vector.shape_cast %124 : vector<16x8xf32> to vector<2x8x8xf32>
    %126 = vector.extract_strided_slice %57 {offsets = [0, 80], sizes = [16, 8], strides = [1, 1]} : vector<16x96xf32> to vector<16x8xf32>
    %127 = vector.shape_cast %126 : vector<16x8xf32> to vector<2x8x8xf32>
    "tpu.trace_start"() <{level = 10 : i32, message = "bmd,bnd->bmn"}> : () -> ()
    %cst_56 = arith.constant dense<0.000000e+00> : vector<2x8x8xf32>
    %128 = tpu.matmul %123, %125, %cst_56 {dimension_numbers = #tpu.dot_dimension_numbers<[2], [2], [1], [1], [0, 0, 0, 1, 1, 1], [0], [0]>} : vector<2x8x8xf32>, vector<2x8x8xf32>, vector<2x8x8xf32> -> vector<2x8x8xf32>
    "tpu.trace_stop"() : () -> ()
    %cst_57 = arith.constant 0.353553385 : f32
    %129 = vector.broadcast %cst_57 : f32 to vector<2x8x8xf32>
    %130 = arith.mulf %128, %129 : vector<2x8x8xf32>
    %131 = vector.shape_cast %24 : vector<8x8xf32> to vector<1x8x8xf32>
    %132 = vector.broadcast %131 : vector<1x8x8xf32> to vector<2x8x8xf32>
    %133 = arith.addf %130, %132 : vector<2x8x8xf32>
    %cst_58 = arith.constant dense<0xFF800000> : vector<2x8xf32>
    %134 = vector.multi_reduction <maximumf>, %133, %cst_58 [2] : vector<2x8x8xf32> to vector<2x8xf32>
    %135 = vector.shape_cast %134 : vector<2x8xf32> to vector<2x8x1xf32>
    %136 = vector.broadcast %135 : vector<2x8x1xf32> to vector<2x8x8xf32>
    %137 = arith.subf %133, %136 : vector<2x8x8xf32>
    %138 = math.exp %137 : vector<2x8x8xf32>
    %cst_59 = arith.constant dense<0.000000e+00> : vector<2x8xf32>
    %139 = vector.multi_reduction <add>, %138, %cst_59 [2] : vector<2x8x8xf32> to vector<2x8xf32>
    %140 = vector.shape_cast %139 : vector<2x8xf32> to vector<2x8x1xf32>
    %141 = tpu.reciprocal %140 {approx = true} : vector<2x8x1xf32> -> vector<2x8x1xf32>
    %142 = vector.broadcast %141 : vector<2x8x1xf32> to vector<2x8x8xf32>
    %143 = arith.mulf %138, %142 : vector<2x8x8xf32>
    %144 = vector.shape_cast %143 : vector<2x8x8xf32> to vector<16x8xf32>
    %c0_60 = arith.constant 0 : index
    %c16 = arith.constant 16 : index
    %145 = vector.load %arg14[%c0_60, %c16] : memref<16x64xf32, #tpu.memory_space<vmem>>, vector<16x8xf32>
    tpu.vector_store %arg14[%c0_60, %c16], %144 {strides = array<i32>} : memref<16x64xf32, #tpu.memory_space<vmem>>, vector<16x8xf32>,
    "tpu.trace_start"() <{level = 10 : i32, message = "bmn,bnd->bmd"}> : () -> ()
    %cst_61 = arith.constant dense<0.000000e+00> : vector<2x8x8xf32>
    %146 = tpu.matmul %143, %127, %cst_61 {dimension_numbers = #tpu.dot_dimension_numbers<[2], [1], [1], [2], [0, 0, 0, 1, 1, 2], [0], [0]>} : vector<2x8x8xf32>, vector<2x8x8xf32>, vector<2x8x8xf32> -> vector<2x8x8xf32>
    "tpu.trace_stop"() : () -> ()
    %147 = vector.shape_cast %146 : vector<2x8x8xf32> to vector<16x8xf32>
    %148 = vector.extract_strided_slice %59 {offsets = [16, 0], sizes = [8, 32], strides = [1, 1]} : vector<32x32xf32> to vector<8x32xf32>
    %cst_62 = arith.constant dense<0.000000e+00> : vector<16x32xf32>
    %149 = tpu.matmul %147, %148, %cst_62 {dimension_numbers = #tpu.dot_dimension_numbers<[1], [0], [0], [1], [0, 0, 1, 1], [], []>} : vector<16x8xf32>, vector<8x32xf32>, vector<16x32xf32> -> vector<16x32xf32>
    %150 = arith.addf %121, %149 : vector<16x32xf32>
    %151 = vector.extract_strided_slice %57 {offsets = [0, 24], sizes = [16, 8], strides = [1, 1]} : vector<16x96xf32> to vector<16x8xf32>
    %152 = vector.shape_cast %151 : vector<16x8xf32> to vector<2x8x8xf32>
    %153 = vector.extract_strided_slice %57 {offsets = [0, 56], sizes = [16, 8], strides = [1, 1]} : vector<16x96xf32> to vector<16x8xf32>
    %154 = vector.shape_cast %153 : vector<16x8xf32> to vector<2x8x8xf32>
    %155 = vector.extract_strided_slice %57 {offsets = [0, 88], sizes = [16, 8], strides = [1, 1]} : vector<16x96xf32> to vector<16x8xf32>
    %156 = vector.shape_cast %155 : vector<16x8xf32> to vector<2x8x8xf32>
    "tpu.trace_start"() <{level = 10 : i32, message = "bmd,bnd->bmn"}> : () -> ()
    %cst_63 = arith.constant dense<0.000000e+00> : vector<2x8x8xf32>
    %157 = tpu.matmul %152, %154, %cst_63 {dimension_numbers = #tpu.dot_dimension_numbers<[2], [2], [1], [1], [0, 0, 0, 1, 1, 1], [0], [0]>} : vector<2x8x8xf32>, vector<2x8x8xf32>, vector<2x8x8xf32> -> vector<2x8x8xf32>
    "tpu.trace_stop"() : () -> ()
    %cst_64 = arith.constant 0.353553385 : f32
    %158 = vector.broadcast %cst_64 : f32 to vector<2x8x8xf32>
    %159 = arith.mulf %157, %158 : vector<2x8x8xf32>
    %160 = vector.shape_cast %24 : vector<8x8xf32> to vector<1x8x8xf32>
    %161 = vector.broadcast %160 : vector<1x8x8xf32> to vector<2x8x8xf32>
    %162 = arith.addf %159, %161 : vector<2x8x8xf32>
    %cst_65 = arith.constant dense<0xFF800000> : vector<2x8xf32>
    %163 = vector.multi_reduction <maximumf>, %162, %cst_65 [2] : vector<2x8x8xf32> to vector<2x8xf32>
    %164 = vector.shape_cast %163 : vector<2x8xf32> to vector<2x8x1xf32>
    %165 = vector.broadcast %164 : vector<2x8x1xf32> to vector<2x8x8xf32>
    %166 = arith.subf %162, %165 : vector<2x8x8xf32>
    %167 = math.exp %166 : vector<2x8x8xf32>
    %cst_66 = arith.constant dense<0.000000e+00> : vector<2x8xf32>
    %168 = vector.multi_reduction <add>, %167, %cst_66 [2] : vector<2x8x8xf32> to vector<2x8xf32>
    %169 = vector.shape_cast %168 : vector<2x8xf32> to vector<2x8x1xf32>
    %170 = tpu.reciprocal %169 {approx = true} : vector<2x8x1xf32> -> vector<2x8x1xf32>
    %171 = vector.broadcast %170 : vector<2x8x1xf32> to vector<2x8x8xf32>
    %172 = arith.mulf %167, %171 : vector<2x8x8xf32>
    %173 = vector.shape_cast %172 : vector<2x8x8xf32> to vector<16x8xf32>
    %c0_67 = arith.constant 0 : index
    %c24 = arith.constant 24 : index
    %174 = vector.load %arg14[%c0_67, %c24] : memref<16x64xf32, #tpu.memory_space<vmem>>, vector<16x8xf32>
    tpu.vector_store %arg14[%c0_67, %c24], %173 {strides = array<i32>} : memref<16x64xf32, #tpu.memory_space<vmem>>, vector<16x8xf32>,
    "tpu.trace_start"() <{level = 10 : i32, message = "bmn,bnd->bmd"}> : () -> ()
    %cst_68 = arith.constant dense<0.000000e+00> : vector<2x8x8xf32>
    %175 = tpu.matmul %172, %156, %cst_68 {dimension_numbers = #tpu.dot_dimension_numbers<[2], [1], [1], [2], [0, 0, 0, 1, 1, 2], [0], [0]>} : vector<2x8x8xf32>, vector<2x8x8xf32>, vector<2x8x8xf32> -> vector<2x8x8xf32>
    "tpu.trace_stop"() : () -> ()
    %176 = vector.shape_cast %175 : vector<2x8x8xf32> to vector<16x8xf32>
    %177 = vector.extract_strided_slice %59 {offsets = [24, 0], sizes = [8, 32], strides = [1, 1]} : vector<32x32xf32> to vector<8x32xf32>
    %cst_69 = arith.constant dense<0.000000e+00> : vector<16x32xf32>
    %178 = tpu.matmul %176, %177, %cst_69 {dimension_numbers = #tpu.dot_dimension_numbers<[1], [0], [0], [1], [0, 0, 1, 1], [], []>} : vector<16x8xf32>, vector<8x32xf32>, vector<16x32xf32> -> vector<16x32xf32>
    %179 = arith.addf %150, %178 : vector<16x32xf32>
    %cst_70 = arith.constant dense<0.000000e+00> : vector<16xf32>
    %180 = vector.multi_reduction <add>, %179, %cst_70 [1] : vector<16x32xf32> to vector<16xf32>
    %181 = vector.shape_cast %180 : vector<16xf32> to vector<16x1xf32>
    %cst_71 = arith.constant 3.200000e+01 : f32
    %182 = vector.broadcast %cst_71 : f32 to vector<16x1xf32>
    %183 = arith.divf %181, %182 : vector<16x1xf32>
    %184 = vector.broadcast %183 : vector<16x1xf32> to vector<16x32xf32>
    %185 = arith.subf %179, %184 : vector<16x32xf32>
    %186 = arith.mulf %185, %185 : vector<16x32xf32>
    %cst_72 = arith.constant dense<0.000000e+00> : vector<16xf32>
    %187 = vector.multi_reduction <add>, %186, %cst_72 [1] : vector<16x32xf32> to vector<16xf32>
    %188 = vector.shape_cast %187 : vector<16xf32> to vector<16x1xf32>
    %cst_73 = arith.constant 3.200000e+01 : f32
    %189 = vector.broadcast %cst_73 : f32 to vector<16x1xf32>
    %190 = arith.divf %188, %189 : vector<16x1xf32>
    %191 = vector.broadcast %183 : vector<16x1xf32> to vector<16x32xf32>
    %192 = arith.subf %179, %191 : vector<16x32xf32>
    %cst_74 = arith.constant 9.99999974E-6 : f32
    %193 = vector.broadcast %cst_74 : f32 to vector<16x1xf32>
    %194 = arith.addf %190, %193 : vector<16x1xf32>
    %195 = math.rsqrt %194 : vector<16x1xf32>
    %196 = vector.broadcast %195 : vector<16x1xf32> to vector<16x32xf32>
    %197 = arith.mulf %192, %196 : vector<16x32xf32>
    %c1 = arith.constant 1 : index
    %c0_75 = arith.constant 0 : index
    %c0_76 = arith.constant 0 : index
    %198 = vector.load %arg7[%c1, %c0_75, %c0_76] : memref<2x1x32xf32, #tpu.memory_space<vmem>>, vector<1x1x32xf32>
    %199 = vector.shape_cast %198 : vector<1x1x32xf32> to vector<1x32xf32>
    %200 = vector.broadcast %199 : vector<1x32xf32> to vector<16x32xf32>
    %201 = arith.mulf %197, %200 : vector<16x32xf32>
    %c1_77 = arith.constant 1 : index
    %c0_78 = arith.constant 0 : index
    %c0_79 = arith.constant 0 : index
    %202 = vector.load %arg8[%c1_77, %c0_78, %c0_79] : memref<2x1x32xf32, #tpu.memory_space<vmem>>, vector<1x1x32xf32>
    %203 = vector.shape_cast %202 : vector<1x1x32xf32> to vector<1x32xf32>
    %204 = vector.broadcast %203 : vector<1x32xf32> to vector<16x32xf32>
    %205 = arith.addf %201, %204 : vector<16x32xf32>
    %c1_80 = arith.constant 1 : index
    %c0_81 = arith.constant 0 : index
    %c0_82 = arith.constant 0 : index
    %206 = vector.load %arg9[%c1_80, %c0_81, %c0_82] : memref<2x32x96xf32, #tpu.memory_space<vmem>>, vector<1x32x96xf32>
    %207 = vector.shape_cast %206 : vector<1x32x96xf32> to vector<32x96xf32>
    %cst_83 = arith.constant dense<0.000000e+00> : vector<16x96xf32>
    %208 = tpu.matmul %205, %207, %cst_83 {dimension_numbers = #tpu.dot_dimension_numbers<[1], [0], [0], [1], [0, 0, 1, 1], [], []>} : vector<16x32xf32>, vector<32x96xf32>, vector<16x96xf32> -> vector<16x96xf32>
    %c1_84 = arith.constant 1 : index
    %c0_85 = arith.constant 0 : index
    %c0_86 = arith.constant 0 : index
    %209 = vector.load %arg10[%c1_84, %c0_85, %c0_86] : memref<2x1x96xf32, #tpu.memory_space<vmem>>, vector<1x1x96xf32>
    %210 = vector.shape_cast %209 : vector<1x1x96xf32> to vector<1x96xf32>
    %211 = vector.broadcast %210 : vector<1x96xf32> to vector<16x96xf32>
    %212 = arith.addf %208, %211 : vector<16x96xf32>
    %c1_87 = arith.constant 1 : index
    %c0_88 = arith.constant 0 : index
    %c0_89 = arith.constant 0 : index
    %213 = vector.load %arg11[%c1_87, %c0_88, %c0_89] : memref<2x32x32xf32, #tpu.memory_space<vmem>>, vector<1x32x32xf32>
    %214 = vector.shape_cast %213 : vector<1x32x32xf32> to vector<32x32xf32>
    %c1_90 = arith.constant 1 : index
    %c0_91 = arith.constant 0 : index
    %c0_92 = arith.constant 0 : index
    %215 = vector.load %arg12[%c1_90, %c0_91, %c0_92] : memref<2x1x32xf32, #tpu.memory_space<vmem>>, vector<1x1x32xf32>
    %216 = vector.shape_cast %215 : vector<1x1x32xf32> to vector<1x32xf32>
    %217 = vector.broadcast %216 : vector<1x32xf32> to vector<16x32xf32>
    %218 = arith.addf %179, %217 : vector<16x32xf32>
    %219 = vector.extract_strided_slice %212 {offsets = [0, 0], sizes = [16, 8], strides = [1, 1]} : vector<16x96xf32> to vector<16x8xf32>
    %220 = vector.shape_cast %219 : vector<16x8xf32> to vector<2x8x8xf32>
    %221 = vector.extract_strided_slice %212 {offsets = [0, 32], sizes = [16, 8], strides = [1, 1]} : vector<16x96xf32> to vector<16x8xf32>
    %222 = vector.shape_cast %221 : vector<16x8xf32> to vector<2x8x8xf32>
    %223 = vector.extract_strided_slice %212 {offsets = [0, 64], sizes = [16, 8], strides = [1, 1]} : vector<16x96xf32> to vector<16x8xf32>
    %224 = vector.shape_cast %223 : vector<16x8xf32> to vector<2x8x8xf32>
    "tpu.trace_start"() <{level = 10 : i32, message = "bmd,bnd->bmn"}> : () -> ()
    %cst_93 = arith.constant dense<0.000000e+00> : vector<2x8x8xf32>
    %225 = tpu.matmul %220, %222, %cst_93 {dimension_numbers = #tpu.dot_dimension_numbers<[2], [2], [1], [1], [0, 0, 0, 1, 1, 1], [0], [0]>} : vector<2x8x8xf32>, vector<2x8x8xf32>, vector<2x8x8xf32> -> vector<2x8x8xf32>
    "tpu.trace_stop"() : () -> ()
    %cst_94 = arith.constant 0.353553385 : f32
    %226 = vector.broadcast %cst_94 : f32 to vector<2x8x8xf32>
    %227 = arith.mulf %225, %226 : vector<2x8x8xf32>
    %228 = vector.shape_cast %24 : vector<8x8xf32> to vector<1x8x8xf32>
    %229 = vector.broadcast %228 : vector<1x8x8xf32> to vector<2x8x8xf32>
    %230 = arith.addf %227, %229 : vector<2x8x8xf32>
    %cst_95 = arith.constant dense<0xFF800000> : vector<2x8xf32>
    %231 = vector.multi_reduction <maximumf>, %230, %cst_95 [2] : vector<2x8x8xf32> to vector<2x8xf32>
    %232 = vector.shape_cast %231 : vector<2x8xf32> to vector<2x8x1xf32>
    %233 = vector.broadcast %232 : vector<2x8x1xf32> to vector<2x8x8xf32>
    %234 = arith.subf %230, %233 : vector<2x8x8xf32>
    %235 = math.exp %234 : vector<2x8x8xf32>
    %cst_96 = arith.constant dense<0.000000e+00> : vector<2x8xf32>
    %236 = vector.multi_reduction <add>, %235, %cst_96 [2] : vector<2x8x8xf32> to vector<2x8xf32>
    %237 = vector.shape_cast %236 : vector<2x8xf32> to vector<2x8x1xf32>
    %238 = tpu.reciprocal %237 {approx = true} : vector<2x8x1xf32> -> vector<2x8x1xf32>
    %239 = vector.broadcast %238 : vector<2x8x1xf32> to vector<2x8x8xf32>
    %240 = arith.mulf %235, %239 : vector<2x8x8xf32>
    %241 = vector.shape_cast %240 : vector<2x8x8xf32> to vector<16x8xf32>
    %c0_97 = arith.constant 0 : index
    %c32 = arith.constant 32 : index
    %242 = vector.load %arg14[%c0_97, %c32] : memref<16x64xf32, #tpu.memory_space<vmem>>, vector<16x8xf32>
    tpu.vector_store %arg14[%c0_97, %c32], %241 {strides = array<i32>} : memref<16x64xf32, #tpu.memory_space<vmem>>, vector<16x8xf32>,
    "tpu.trace_start"() <{level = 10 : i32, message = "bmn,bnd->bmd"}> : () -> ()
    %cst_98 = arith.constant dense<0.000000e+00> : vector<2x8x8xf32>
    %243 = tpu.matmul %240, %224, %cst_98 {dimension_numbers = #tpu.dot_dimension_numbers<[2], [1], [1], [2], [0, 0, 0, 1, 1, 2], [0], [0]>} : vector<2x8x8xf32>, vector<2x8x8xf32>, vector<2x8x8xf32> -> vector<2x8x8xf32>
    "tpu.trace_stop"() : () -> ()
    %244 = vector.shape_cast %243 : vector<2x8x8xf32> to vector<16x8xf32>
    %245 = vector.extract_strided_slice %214 {offsets = [0, 0], sizes = [8, 32], strides = [1, 1]} : vector<32x32xf32> to vector<8x32xf32>
    %cst_99 = arith.constant dense<0.000000e+00> : vector<16x32xf32>
    %246 = tpu.matmul %244, %245, %cst_99 {dimension_numbers = #tpu.dot_dimension_numbers<[1], [0], [0], [1], [0, 0, 1, 1], [], []>} : vector<16x8xf32>, vector<8x32xf32>, vector<16x32xf32> -> vector<16x32xf32>
    %247 = arith.addf %218, %246 : vector<16x32xf32>
    %248 = vector.extract_strided_slice %212 {offsets = [0, 8], sizes = [16, 8], strides = [1, 1]} : vector<16x96xf32> to vector<16x8xf32>
    %249 = vector.shape_cast %248 : vector<16x8xf32> to vector<2x8x8xf32>
    %250 = vector.extract_strided_slice %212 {offsets = [0, 40], sizes = [16, 8], strides = [1, 1]} : vector<16x96xf32> to vector<16x8xf32>
    %251 = vector.shape_cast %250 : vector<16x8xf32> to vector<2x8x8xf32>
    %252 = vector.extract_strided_slice %212 {offsets = [0, 72], sizes = [16, 8], strides = [1, 1]} : vector<16x96xf32> to vector<16x8xf32>
    %253 = vector.shape_cast %252 : vector<16x8xf32> to vector<2x8x8xf32>
    "tpu.trace_start"() <{level = 10 : i32, message = "bmd,bnd->bmn"}> : () -> ()
    %cst_100 = arith.constant dense<0.000000e+00> : vector<2x8x8xf32>
    %254 = tpu.matmul %249, %251, %cst_100 {dimension_numbers = #tpu.dot_dimension_numbers<[2], [2], [1], [1], [0, 0, 0, 1, 1, 1], [0], [0]>} : vector<2x8x8xf32>, vector<2x8x8xf32>, vector<2x8x8xf32> -> vector<2x8x8xf32>
    "tpu.trace_stop"() : () -> ()
    %cst_101 = arith.constant 0.353553385 : f32
    %255 = vector.broadcast %cst_101 : f32 to vector<2x8x8xf32>
    %256 = arith.mulf %254, %255 : vector<2x8x8xf32>
    %257 = vector.shape_cast %24 : vector<8x8xf32> to vector<1x8x8xf32>
    %258 = vector.broadcast %257 : vector<1x8x8xf32> to vector<2x8x8xf32>
    %259 = arith.addf %256, %258 : vector<2x8x8xf32>
    %cst_102 = arith.constant dense<0xFF800000> : vector<2x8xf32>
    %260 = vector.multi_reduction <maximumf>, %259, %cst_102 [2] : vector<2x8x8xf32> to vector<2x8xf32>
    %261 = vector.shape_cast %260 : vector<2x8xf32> to vector<2x8x1xf32>
    %262 = vector.broadcast %261 : vector<2x8x1xf32> to vector<2x8x8xf32>
    %263 = arith.subf %259, %262 : vector<2x8x8xf32>
    %264 = math.exp %263 : vector<2x8x8xf32>
    %cst_103 = arith.constant dense<0.000000e+00> : vector<2x8xf32>
    %265 = vector.multi_reduction <add>, %264, %cst_103 [2] : vector<2x8x8xf32> to vector<2x8xf32>
    %266 = vector.shape_cast %265 : vector<2x8xf32> to vector<2x8x1xf32>
    %267 = tpu.reciprocal %266 {approx = true} : vector<2x8x1xf32> -> vector<2x8x1xf32>
    %268 = vector.broadcast %267 : vector<2x8x1xf32> to vector<2x8x8xf32>
    %269 = arith.mulf %264, %268 : vector<2x8x8xf32>
    %270 = vector.shape_cast %269 : vector<2x8x8xf32> to vector<16x8xf32>
    %c0_104 = arith.constant 0 : index
    %c40 = arith.constant 40 : index
    %271 = vector.load %arg14[%c0_104, %c40] : memref<16x64xf32, #tpu.memory_space<vmem>>, vector<16x8xf32>
    tpu.vector_store %arg14[%c0_104, %c40], %270 {strides = array<i32>} : memref<16x64xf32, #tpu.memory_space<vmem>>, vector<16x8xf32>,
    "tpu.trace_start"() <{level = 10 : i32, message = "bmn,bnd->bmd"}> : () -> ()
    %cst_105 = arith.constant dense<0.000000e+00> : vector<2x8x8xf32>
    %272 = tpu.matmul %269, %253, %cst_105 {dimension_numbers = #tpu.dot_dimension_numbers<[2], [1], [1], [2], [0, 0, 0, 1, 1, 2], [0], [0]>} : vector<2x8x8xf32>, vector<2x8x8xf32>, vector<2x8x8xf32> -> vector<2x8x8xf32>
    "tpu.trace_stop"() : () -> ()
    %273 = vector.shape_cast %272 : vector<2x8x8xf32> to vector<16x8xf32>
    %274 = vector.extract_strided_slice %214 {offsets = [8, 0], sizes = [8, 32], strides = [1, 1]} : vector<32x32xf32> to vector<8x32xf32>
    %cst_106 = arith.constant dense<0.000000e+00> : vector<16x32xf32>
    %275 = tpu.matmul %273, %274, %cst_106 {dimension_numbers = #tpu.dot_dimension_numbers<[1], [0], [0], [1], [0, 0, 1, 1], [], []>} : vector<16x8xf32>, vector<8x32xf32>, vector<16x32xf32> -> vector<16x32xf32>
    %276 = arith.addf %247, %275 : vector<16x32xf32>
    %277 = vector.extract_strided_slice %212 {offsets = [0, 16], sizes = [16, 8], strides = [1, 1]} : vector<16x96xf32> to vector<16x8xf32>
    %278 = vector.shape_cast %277 : vector<16x8xf32> to vector<2x8x8xf32>
    %279 = vector.extract_strided_slice %212 {offsets = [0, 48], sizes = [16, 8], strides = [1, 1]} : vector<16x96xf32> to vector<16x8xf32>
    %280 = vector.shape_cast %279 : vector<16x8xf32> to vector<2x8x8xf32>
    %281 = vector.extract_strided_slice %212 {offsets = [0, 80], sizes = [16, 8], strides = [1, 1]} : vector<16x96xf32> to vector<16x8xf32>
    %282 = vector.shape_cast %281 : vector<16x8xf32> to vector<2x8x8xf32>
    "tpu.trace_start"() <{level = 10 : i32, message = "bmd,bnd->bmn"}> : () -> ()
    %cst_107 = arith.constant dense<0.000000e+00> : vector<2x8x8xf32>
    %283 = tpu.matmul %278, %280, %cst_107 {dimension_numbers = #tpu.dot_dimension_numbers<[2], [2], [1], [1], [0, 0, 0, 1, 1, 1], [0], [0]>} : vector<2x8x8xf32>, vector<2x8x8xf32>, vector<2x8x8xf32> -> vector<2x8x8xf32>
    "tpu.trace_stop"() : () -> ()
    %cst_108 = arith.constant 0.353553385 : f32
    %284 = vector.broadcast %cst_108 : f32 to vector<2x8x8xf32>
    %285 = arith.mulf %283, %284 : vector<2x8x8xf32>
    %286 = vector.shape_cast %24 : vector<8x8xf32> to vector<1x8x8xf32>
    %287 = vector.broadcast %286 : vector<1x8x8xf32> to vector<2x8x8xf32>
    %288 = arith.addf %285, %287 : vector<2x8x8xf32>
    %cst_109 = arith.constant dense<0xFF800000> : vector<2x8xf32>
    %289 = vector.multi_reduction <maximumf>, %288, %cst_109 [2] : vector<2x8x8xf32> to vector<2x8xf32>
    %290 = vector.shape_cast %289 : vector<2x8xf32> to vector<2x8x1xf32>
    %291 = vector.broadcast %290 : vector<2x8x1xf32> to vector<2x8x8xf32>
    %292 = arith.subf %288, %291 : vector<2x8x8xf32>
    %293 = math.exp %292 : vector<2x8x8xf32>
    %cst_110 = arith.constant dense<0.000000e+00> : vector<2x8xf32>
    %294 = vector.multi_reduction <add>, %293, %cst_110 [2] : vector<2x8x8xf32> to vector<2x8xf32>
    %295 = vector.shape_cast %294 : vector<2x8xf32> to vector<2x8x1xf32>
    %296 = tpu.reciprocal %295 {approx = true} : vector<2x8x1xf32> -> vector<2x8x1xf32>
    %297 = vector.broadcast %296 : vector<2x8x1xf32> to vector<2x8x8xf32>
    %298 = arith.mulf %293, %297 : vector<2x8x8xf32>
    %299 = vector.shape_cast %298 : vector<2x8x8xf32> to vector<16x8xf32>
    %c0_111 = arith.constant 0 : index
    %c48 = arith.constant 48 : index
    %300 = vector.load %arg14[%c0_111, %c48] : memref<16x64xf32, #tpu.memory_space<vmem>>, vector<16x8xf32>
    tpu.vector_store %arg14[%c0_111, %c48], %299 {strides = array<i32>} : memref<16x64xf32, #tpu.memory_space<vmem>>, vector<16x8xf32>,
    "tpu.trace_start"() <{level = 10 : i32, message = "bmn,bnd->bmd"}> : () -> ()
    %cst_112 = arith.constant dense<0.000000e+00> : vector<2x8x8xf32>
    %301 = tpu.matmul %298, %282, %cst_112 {dimension_numbers = #tpu.dot_dimension_numbers<[2], [1], [1], [2], [0, 0, 0, 1, 1, 2], [0], [0]>} : vector<2x8x8xf32>, vector<2x8x8xf32>, vector<2x8x8xf32> -> vector<2x8x8xf32>
    "tpu.trace_stop"() : () -> ()
    %302 = vector.shape_cast %301 : vector<2x8x8xf32> to vector<16x8xf32>
    %303 = vector.extract_strided_slice %214 {offsets = [16, 0], sizes = [8, 32], strides = [1, 1]} : vector<32x32xf32> to vector<8x32xf32>
    %cst_113 = arith.constant dense<0.000000e+00> : vector<16x32xf32>
    %304 = tpu.matmul %302, %303, %cst_113 {dimension_numbers = #tpu.dot_dimension_numbers<[1], [0], [0], [1], [0, 0, 1, 1], [], []>} : vector<16x8xf32>, vector<8x32xf32>, vector<16x32xf32> -> vector<16x32xf32>
    %305 = arith.addf %276, %304 : vector<16x32xf32>
    %306 = vector.extract_strided_slice %212 {offsets = [0, 24], sizes = [16, 8], strides = [1, 1]} : vector<16x96xf32> to vector<16x8xf32>
    %307 = vector.shape_cast %306 : vector<16x8xf32> to vector<2x8x8xf32>
    %308 = vector.extract_strided_slice %212 {offsets = [0, 56], sizes = [16, 8], strides = [1, 1]} : vector<16x96xf32> to vector<16x8xf32>
    %309 = vector.shape_cast %308 : vector<16x8xf32> to vector<2x8x8xf32>
    %310 = vector.extract_strided_slice %212 {offsets = [0, 88], sizes = [16, 8], strides = [1, 1]} : vector<16x96xf32> to vector<16x8xf32>
    %311 = vector.shape_cast %310 : vector<16x8xf32> to vector<2x8x8xf32>
    "tpu.trace_start"() <{level = 10 : i32, message = "bmd,bnd->bmn"}> : () -> ()
    %cst_114 = arith.constant dense<0.000000e+00> : vector<2x8x8xf32>
    %312 = tpu.matmul %307, %309, %cst_114 {dimension_numbers = #tpu.dot_dimension_numbers<[2], [2], [1], [1], [0, 0, 0, 1, 1, 1], [0], [0]>} : vector<2x8x8xf32>, vector<2x8x8xf32>, vector<2x8x8xf32> -> vector<2x8x8xf32>
    "tpu.trace_stop"() : () -> ()
    %cst_115 = arith.constant 0.353553385 : f32
    %313 = vector.broadcast %cst_115 : f32 to vector<2x8x8xf32>
    %314 = arith.mulf %312, %313 : vector<2x8x8xf32>
    %315 = vector.shape_cast %24 : vector<8x8xf32> to vector<1x8x8xf32>
    %316 = vector.broadcast %315 : vector<1x8x8xf32> to vector<2x8x8xf32>
    %317 = arith.addf %314, %316 : vector<2x8x8xf32>
    %cst_116 = arith.constant dense<0xFF800000> : vector<2x8xf32>
    %318 = vector.multi_reduction <maximumf>, %317, %cst_116 [2] : vector<2x8x8xf32> to vector<2x8xf32>
    %319 = vector.shape_cast %318 : vector<2x8xf32> to vector<2x8x1xf32>
    %320 = vector.broadcast %319 : vector<2x8x1xf32> to vector<2x8x8xf32>
    %321 = arith.subf %317, %320 : vector<2x8x8xf32>
    %322 = math.exp %321 : vector<2x8x8xf32>
    %cst_117 = arith.constant dense<0.000000e+00> : vector<2x8xf32>
    %323 = vector.multi_reduction <add>, %322, %cst_117 [2] : vector<2x8x8xf32> to vector<2x8xf32>
    %324 = vector.shape_cast %323 : vector<2x8xf32> to vector<2x8x1xf32>
    %325 = tpu.reciprocal %324 {approx = true} : vector<2x8x1xf32> -> vector<2x8x1xf32>
    %326 = vector.broadcast %325 : vector<2x8x1xf32> to vector<2x8x8xf32>
    %327 = arith.mulf %322, %326 : vector<2x8x8xf32>
    %328 = vector.shape_cast %327 : vector<2x8x8xf32> to vector<16x8xf32>
    %c0_118 = arith.constant 0 : index
    %c56 = arith.constant 56 : index
    %329 = vector.load %arg14[%c0_118, %c56] : memref<16x64xf32, #tpu.memory_space<vmem>>, vector<16x8xf32>
    tpu.vector_store %arg14[%c0_118, %c56], %328 {strides = array<i32>} : memref<16x64xf32, #tpu.memory_space<vmem>>, vector<16x8xf32>,
    "tpu.trace_start"() <{level = 10 : i32, message = "bmn,bnd->bmd"}> : () -> ()
    %cst_119 = arith.constant dense<0.000000e+00> : vector<2x8x8xf32>
    %330 = tpu.matmul %327, %311, %cst_119 {dimension_numbers = #tpu.dot_dimension_numbers<[2], [1], [1], [2], [0, 0, 0, 1, 1, 2], [0], [0]>} : vector<2x8x8xf32>, vector<2x8x8xf32>, vector<2x8x8xf32> -> vector<2x8x8xf32>
    "tpu.trace_stop"() : () -> ()
    %331 = vector.shape_cast %330 : vector<2x8x8xf32> to vector<16x8xf32>
    %332 = vector.extract_strided_slice %214 {offsets = [24, 0], sizes = [8, 32], strides = [1, 1]} : vector<32x32xf32> to vector<8x32xf32>
    %cst_120 = arith.constant dense<0.000000e+00> : vector<16x32xf32>
    %333 = tpu.matmul %331, %332, %cst_120 {dimension_numbers = #tpu.dot_dimension_numbers<[1], [0], [0], [1], [0, 0, 1, 1], [], []>} : vector<16x8xf32>, vector<8x32xf32>, vector<16x32xf32> -> vector<16x32xf32>
    %334 = arith.addf %305, %333 : vector<16x32xf32>
    %335 = arith.addf %18, %334 : vector<16x32xf32>
    %c0_121 = arith.constant 0 : index
    %c0_122 = arith.constant 0 : index
    %336 = vector.load %arg13[%c0_121, %c0_122] : memref<16x32xf32, #tpu.memory_space<vmem>>, vector<16x32xf32>
    tpu.vector_store %arg13[%c0_121, %c0_122], %335 {strides = array<i32>} : memref<16x32xf32, #tpu.memory_space<vmem>>, vector<16x32xf32>,
    return
  }
}

</mosaic_0001>

<bundles_post_ra>
// kernel: region_encoder_forward.1
= control target key start
LH: loop header
LB: loop body
LE: loop exit
PB: predicated region body
PF: predicated region fallthrough
CT: control target
= control target key end

     0   :  { %22 = vsyncpa [#allocation5], 0  ;;  %s5503_s0 = inlined_call_operand.<no memory space> [shape: f32[1,1], index: 0, kind: input, shape index: {}]   ;;  %s5504_s1 = inlined_call_operand.<no memory space> [shape: f32[1,1], index: 1, kind: input, shape index: {}]   ;;  %s5505_s2 = inlined_call_operand.hbm [shape: f32[16,16], index: 2, kind: input, shape index: {}]   ;;  %s5506_s3 = inlined_call_operand.vmem [shape: f32[16,32], index: 3, kind: input, shape index: {}]   ;;  %s5507_s4 = inlined_call_operand.hbm [shape: f32[1,32], index: 4, kind: input, shape index: {}]   ;;  %s5508_s5 = inlined_call_operand.hbm [shape: f32[32,32], index: 5, kind: input, shape index: {}]   ;;  %s5509_s6 = inlined_call_operand.hbm [shape: f32[1,32], index: 6, kind: input, shape index: {}]   ;;  %s5510_s7 = inlined_call_operand.vmem [shape: f32[2,1,32], index: 7, kind: input, shape index: {}]   ;;  %s5511_s8 = inlined_call_operand.vmem [shape: f32[2,1,32], index: 8, kind: input, shape index: {}]   ;;  %s5512_s9 = inlined_call_operand.hbm [shape: f32[2,32,96], index: 9, kind: input, shape index: {}]   ;;  %s5513_s10 = inlined_call_operand.vmem [shape: f32[2,1,96], index: 10, kind: input, shape index: {}]   ;;  %s5514_s11 = inlined_call_operand.hbm [shape: f32[2,32,32], index: 11, kind: input, shape index: {}]   ;;  %s5515_s12 = inlined_call_operand.vmem [shape: f32[2,1,32], index: 12, kind: input, shape index: {}]   ;;  %s5516_s13 = inlined_call_operand.hbm [shape: f32[16,32], index: 13, kind: output, shape index: {0}]   ;;  %s5517_s14 = inlined_call_operand.vmem [shape: f32[16,64], index: 14, kind: output, shape index: {1}]  }
   0x1   :  { %23 = vsyncpa [#allocation8], 0 }
   0x2   :  { %24 = vsyncpa [#allocation11], 0 }
   0x3   :  { %25 = vsyncpa [#allocation14], 0 }
   0x4   :  { %26 = vsyncpa [#allocation6], 0  ;;  %s4801_s29 = smov [#allocation7]   ;;  %s4802_s15 = smov [#allocation10]  }
   0x5   :  { %s51_s30 = sshll.u32 %s4801_s29, 4  ;;  %s73_s16 = sshll.u32 %s4802_s15, 4  ;;  %s52_s30 = int_to_ptr.vmem [resolvable:$true] %s51_s30  ;;  %s74_s16 = int_to_ptr.vmem [resolvable:$true] %s73_s16 }
   0x6   :  { %s4637_s19 = scalar_lea.hbm %s5507_s4, 16 }
   0x7   :  { %p4638_p0 = scmp.ne.s32.totalorder %s5507_s4, %s4637_s19  ;;  %p4641_p1 = scmp.lt.u32.totalorder %s4637_s19, %s5507_s4 }
   0x9   :  { %p4643_p2 = pnand %p4641_p1, %p4638_p0 }
   0xb   :  { %4646 = shalt.err (!%p4643_p2)
}
   0xc   :  { %s4647_s24 = scalar_lea.vmem %s52_s30, 16  ;;  %s4651_s25 = scalar_lea.vmem %s52_s30, 32 }
   0xd   :  { %p4648_p3 = scmp.ne.s32.totalorder %s52_s30, %s4647_s24  ;;  %p4652_p4 = scmp.lt.s32.totalorder %s52_s30, %s52_s30 }
   0xe   :  { %p4653_p5 = scmp.lt.s32.totalorder %s4651_s25, %s4647_s24 }
  0x10   :  { %p4654_p6 = por %p4653_p5, %p4652_p4 }
  0x12   :  { %p4655_p7 = pnand %p4654_p6, %p4648_p3 }
  0x14   :  { %4658 = shalt.err (!%p4655_p7)
}
  0x15   :  { %54 = dma.hbm_to_vmem [thread:$0]  %s5507_s4, 16, %s52_s30, [#allocation8]  }
  0x16   :  { %s4659_s15 = scalar_lea.hbm %s5509_s6, 16 }
  0x17   :  { %p4660_p8 = scmp.ne.s32.totalorder %s5509_s6, %s4659_s15  ;;  %p4663_p9 = scmp.lt.u32.totalorder %s4659_s15, %s5509_s6 }
  0x19   :  { %p4665_p10 = pnand %p4663_p9, %p4660_p8 }
  0x1b   :  { %4668 = shalt.err (!%p4665_p10)
}
  0x1c   :  { %s4669_s21 = scalar_lea.vmem %s74_s16, 16  ;;  %s4673_s22 = scalar_lea.vmem %s74_s16, 32 }
  0x1d   :  { %p4670_p11 = scmp.ne.s32.totalorder %s74_s16, %s4669_s21  ;;  %p4674_p12 = scmp.lt.s32.totalorder %s74_s16, %s74_s16 }
  0x1e   :  { %p4675_p13 = scmp.lt.s32.totalorder %s4673_s22, %s4669_s21 }
  0x20   :  { %p4676_p0 = por %p4675_p13, %p4674_p12 }
  0x22   :  { %p4677_p1 = pnand %p4676_p0, %p4670_p11 }
  0x24   :  { %4680 = shalt.err (!%p4677_p1)
}
  0x25   :  { %76 = dma.hbm_to_vmem [thread:$0]  %s5509_s6, 16, %s74_s16, [#allocation11]  }
  0x26   :  { %s4803_s23 = smov [#allocation4]   ;;  %s4681_s27 = scalar_lea.hbm %s5505_s2, 256 }
  0x27   :  { %s36_s24 = sshll.u32 %s4803_s23, 4  ;;  %p4682_p2 = scmp.ne.s32.totalorder %s5505_s2, %s4681_s27  ;;  %s37_s24 = int_to_ptr.vmem [resolvable:$true] %s36_s24 }
  0x28   :  { %p4685_p3 = scmp.lt.u32.totalorder %s4681_s27, %s5505_s2 }
  0x2a   :  { %p4687_p4 = pnand %p4685_p3, %p4682_p2 }
  0x2c   :  { %4690 = shalt.err (!%p4687_p4)
}
  0x2d   :  { %s4691_s18 = scalar_lea.vmem %s37_s24, 256  ;;  %p4696_p6 = scmp.lt.s32.totalorder %s37_s24, %s37_s24 }
  0x2e   :  { %p4692_p5 = scmp.ne.s32.totalorder %s37_s24, %s4691_s18  ;;  %p4697_p7 = scmp.lt.s32.totalorder %s4691_s18, %s4691_s18 }
  0x30   :  { %p4698_p8 = por %p4697_p7, %p4696_p6 }
  0x32   :  { %p4699_p9 = pnand %p4698_p8, %p4692_p5 }
  0x34   :  { %4702 = shalt.err (!%p4699_p9)
}
  0x35   :  { %s4804_s6 = smov 128   ;;  %s4805_s16 = smov 8  }
  0x36   :  { %42 = dma.hbm_to_vmem [thread:$0]  %s5505_s2, 256, %s37_s24, [#allocation5], %s4804_s6, %s4804_s6, %s4805_s16  }
  0x37   :  { %s4806_s21 = smov [#allocation9]   ;;  %s4807_s4 = smov [#allocation12]  }
  0x38   :  { %s60_s22 = sshll.u32 %s4806_s21, 4  ;;  %s86_s30 = sshll.u32 %s4807_s4, 4  ;;  %s61_s22 = int_to_ptr.vmem [resolvable:$true] %s60_s22  ;;  %s87_s30 = int_to_ptr.vmem [resolvable:$true] %s86_s30 }
  0x39   :  { %s4703_s26 = scalar_lea.hbm %s5508_s5, 512 }
  0x3a   :  { %p4704_p10 = scmp.ne.s32.totalorder %s5508_s5, %s4703_s26  ;;  %p4707_p11 = scmp.lt.u32.totalorder %s4703_s26, %s5508_s5 }
  0x3c   :  { %p4709_p12 = pnand %p4707_p11, %p4704_p10 }
  0x3e   :  { %4712 = shalt.err (!%p4709_p12)
}
  0x3f   :  { %s4713_s2 = scalar_lea.vmem %s61_s22, 512  ;;  %p4718_p0 = scmp.lt.s32.totalorder %s61_s22, %s61_s22 }
  0x40   :  { %p4714_p13 = scmp.ne.s32.totalorder %s61_s22, %s4713_s2  ;;  %p4719_p1 = scmp.lt.s32.totalorder %s4713_s2, %s4713_s2 }
  0x42   :  { %p4720_p2 = por %p4719_p1, %p4718_p0 }
  0x44   :  { %p4721_p3 = pnand %p4720_p2, %p4714_p13 }
  0x46   :  { %4724 = shalt.err (!%p4721_p3)
}
  0x47   :  { %66 = dma.hbm_to_vmem [thread:$0]  %s5508_s5, 512, %s61_s22, [#allocation8], %s4804_s6, %s4804_s6, %s4805_s16  }
  0x48   :  { %s4725_s20 = scalar_lea.hbm %s5512_s9, 1024 }
  0x49   :  { %p4726_p4 = scmp.ne.s32.totalorder %s5512_s9, %s4725_s20  ;;  %p4729_p5 = scmp.lt.u32.totalorder %s4725_s20, %s5512_s9 }
  0x4b   :  { %p4731_p6 = pnand %p4729_p5, %p4726_p4 }
  0x4d   :  { %4734 = shalt.err (!%p4731_p6)
}
  0x4e   :  { %s4735_s26 = scalar_lea.vmem %s87_s30, 1024  ;;  %p4740_p8 = scmp.lt.s32.totalorder %s87_s30, %s87_s30 }
  0x4f   :  { %p4736_p7 = scmp.ne.s32.totalorder %s87_s30, %s4735_s26  ;;  %p4741_p9 = scmp.lt.s32.totalorder %s4735_s26, %s4735_s26 }
  0x51   :  { %p4742_p10 = por %p4741_p9, %p4740_p8 }
  0x53   :  { %p4743_p11 = pnand %p4742_p10, %p4736_p7 }
  0x55   :  { %4746 = shalt.err (!%p4743_p11)
}
  0x56   :  { %92 = dma.hbm_to_vmem [thread:$0]  %s5512_s9, 1024, %s87_s30, [#allocation11], %s4804_s6, %s4804_s6, %s4805_s16  }
  0x57   :  { %s4808_s27 = smov [#allocation13]   ;;  %s4747_s2 = scalar_lea.hbm %s5514_s11, 1024 }
  0x58   :  { %s100_s28 = sshll.u32 %s4808_s27, 4  ;;  %p4748_p12 = scmp.ne.s32.totalorder %s5514_s11, %s4747_s2  ;;  %s101_s28 = int_to_ptr.vmem [resolvable:$true] %s100_s28 }
  0x59   :  { %p4751_p13 = scmp.lt.u32.totalorder %s4747_s2, %s5514_s11 }
  0x5b   :  { %p4753_p0 = pnand %p4751_p13, %p4748_p12 }
  0x5d   :  { %4756 = shalt.err (!%p4753_p0)
}
  0x5e   :  { %s4757_s20 = scalar_lea.vmem %s101_s28, 1024  ;;  %p4762_p2 = scmp.lt.s32.totalorder %s101_s28, %s101_s28 }
  0x5f   :  { %p4758_p1 = scmp.ne.s32.totalorder %s101_s28, %s4757_s20  ;;  %p4763_p3 = scmp.lt.s32.totalorder %s4757_s20, %s4757_s20 }
  0x61   :  { %p4764_p4 = por %p4763_p3, %p4762_p2 }
  0x63   :  { %p4765_p5 = pnand %p4764_p4, %p4758_p1 }
  0x65   :  { %4768 = shalt.err (!%p4765_p5)
}
  0x66   :  { %106 = dma.hbm_to_vmem [thread:$0]  %s5514_s11, 1024, %s101_s28, [#allocation14], %s4804_s6, %s4804_s6, %s4805_s16  }
  0x67   :  { %4791 = dma.done.wait [#allocation5], 256  }
  0x68   :  { %4792 = vsyncadd [#allocation5], 4294967040 }
  0x69   :  { %4793 = dma.done.wait [#allocation8], 528  }
  0x6a   :  { %4794 = vsyncadd [#allocation8], 4294966768 }
  0x6b   :  { %4795 = dma.done.wait [#allocation11], 1040  }
  0x6c   :  { %4796 = vsyncadd [#allocation11], 4294966256 }
  0x6d   :  { %4797 = dma.done.wait [#allocation14], 1024  }
  0x6e   :  { %4798 = vsyncadd [#allocation14], 4294966272  ;;  %v130_v0 = vstv %s5503_s0  ;;  %v137_v1 = vld [vmem:[%s5506_s3] sm:$0xff]  ;;  %v138_v2 = vld [vmem:[%s5506_s3 + $0x8] sm:$0xff]  ;;  %v134_v4 = vstv %s5504_s1  ;;  %vm146_vm0 = vcmask 130048   ;;  %vm241_vm1 = vcmask 261120  }
  0x6f   :  { %v127_v3 = vld [vmem:[#allocation4] sm:$0xff]  ;;  %v4496_v5 = vpack.c.bf16 %v138_v2, %v137_v1  ;;  %v128_v6 = vld [vmem:[#allocation4 + $0x8] sm:$0xff]  ;;  %v230_v8 = vld [vmem:[#allocation9] sm:$0xff]  ;;  %v4809_v63 = vmov 0.0   ;;  %vm4810_vm2 = vmmov 0   ;;  %s4811_s15 = smov 96  }
  0x70   :  { %v131_v7 = vmul.f32 %v130_v0, %v127_v3  ;;  %v231_v9 = vld [vmem:[#allocation9 + $0x8] sm:$0xff]  ;;  %v132_v10 = vmul.f32 %v130_v0, %v128_v6  ;;  %v232_v14 = vld [vmem:[#allocation9 + $0x10] sm:$0xff]  ;;  %v233_v15 = vld [vmem:[#allocation9 + $0x18] sm:$0xff]  ;;  %vm482_vm3 = vcmask 64512   ;;  %s4812_s2 = smov 64   ;;  %s4813_s24 = smov 88  }
  0x71   :  { %v4500_v11 = vpack.c.bf16 %v231_v9, %v230_v8  ;;  %4497 = vmatprep.subr.bf16.mxu0 %v4496_v5  ;;  %v4504_v16 = vpack.c.bf16 %v233_v15, %v232_v14  ;;  %v4060_v17 = vld [vmem:[#allocation7] ss:$0 sm:$0xff]  ;;  %v4063_v24 = vld [vmem:[#allocation10] ss:$0 sm:$0xff]  ;;  %v374_v41 = vld [vmem:[#allocation12] sm:$0xff]  ;;  %s4814_s17 = smov 120  }
  0x72   :  { %v135_v12 = vadd.f32 %v134_v4, %v131_v7  ;;  %4499 = vmatpush3.bf16.msra.mxu0 %v4496_v5  ;;  %v136_v13 = vadd.f32 %v134_v4, %v132_v10  ;;  %v375_v42 = vld [vmem:[#allocation12 + $0x8] sm:$0xff]  ;;  %v376_v44 = vld [vmem:[#allocation12 + $0x10] sm:$0xff]  ;;  %v377_v45 = vld [vmem:[#allocation12 + $0x18] sm:$0xff]  ;;  %v323_v7 = vlaneseq  ;;  %s4815_s18 = smov 80   ;;  %s4816_s21 = smov 56   ;;  %vm1087_vm5 = vcmask 130112  }
  0x73   :  { %4501 = vmatprep.subr.bf16.mxu1 %v4500_v11  ;;  %v4508_v43 = vpack.c.bf16 %v375_v42, %v374_v41  ;;  %v4512_v46 = vpack.c.bf16 %v377_v45, %v376_v44  ;;  %v4066_v54 = vld [vmem:[%s5510_s7] ss:$0 sm:$0xff]  ;;  %s4817_s4 = smov 112   ;;  %s4818_s23 = smov 48   ;;  %vm1513_vm6 = vcmask 195712   ;;  %vm1939_vm7 = vcmask 261312  }
  0x74   :  { %4260 = vmatprep.mubr.msk.f32.mxu0 %vm146_vm0, %v135_v12  ;;  %4503 = vmatpush3.bf16.msra.mxu1 %v4500_v11  ;;  %v4067_v56 = vld [vmem:[%s5511_s8] ss:$0 sm:$0xff]  ;;  %v324_v8 = vshrl.u32 %v323_v7, 7  ;;  %v326_v9 = vand.u32 127, %v323_v7  ;;  %s4819_s25 = smov 72   ;;  %s4820_s26 = smov 104  }
  0x75   :  { %4261 = vmatmul.mubr.msk.f32.vlgmr.msra.gmra.mrb[0].mxu0 %vm146_vm0, %v136_v13  ;;  %4505 = vmatprep.subr.bf16.mxu1 %v4504_v16  ;;  %v4068_v0 = vld [vmem:[%s5513_s10] ss:$0 sm:$0xff]  ;;  %s4821_s5 = smov 40   ;;  %s4824_s29 = smov 32   ;;  %vm2518_vm8 = vcmask 326912   ;;  %vm2944_vm9 = vcmask 392512  }
  0x76   :  { %4509 = vmatprep.subr.bf16.mxu0 %v4508_v43  ;;  %vm327_vm4 = vcmp.eq.s32.totalorder %v324_v8, %v326_v9  ;;  %vm3370_vm10 = vcmask 458112   ;;  %vm3796_vm11 = vcmask 523712  }
  0x77   :  { %4511 = vmatpush3.bf16.msra.mxu0 %v4508_v43  ;;  %v5049_v11 = vsel %vm327_vm4, -inf, %v4809_v63 }
  0x78   :  { %4507 = vmatpush3.bf16.msra.mxu1 %v4504_v16  ;;  %4513 = vmatprep.subr.bf16.mxu0 %v4512_v46 }
  0x79   :  { %4285 = vmatprep.subr.mxu1 %v4809_v63 }
  0x7b   :  { %4515 = vmatpush3.bf16.msra.mxu0 %v4512_v46 }
  0x7c   :  { %4290 = vmatprep.subr.mxu0 %v4809_v63 }
 0x148   :  { %v4262_v18 = vpop.f32.mrb[0].mxu0 }
 0x149   :  { %v225_v19 = vadd.f32 %v4262_v18, %v4060_v17  ;;  %v219_v20 = vpop.f32.mrb[1].mxu0 }
 0x14a   :  { %v220_v21 = vadd.f32 %v4060_v17, %v219_v20 }
 0x14b   :  { %v229_v23 = vmax.f32 %v225_v19, 0.0 }
 0x14c   :  { %v228_v22 = vmax.f32 %v220_v21, 0.0 }
 0x14e   :  { %4271 = vmatprep.mubr.msk.f32.mxu1 %vm241_vm1, %v228_v22 }
 0x14f   :  { %4272 = vmatmul.mubr.msk.f32.vlgmr.msra.gmra.mrb[0].mxu1 %vm241_vm1, %v229_v23 }
 0x150   :  { %4287 = vmatprep.mubr.msk.f32.mxu1 %vm4810_vm2, %v4809_v63 }
 0x222   :  { %v4273_v25 = vpop.f32.mrb[0].mxu1 }
 0x223   :  { %v314_v26 = vpop.f32.mrb[1].mxu1  ;;  %v5001_v28 = vadd.f32 %v4273_v25, %v4063_v24 }
 0x224   :  { %v4999_v27 = vadd.f32 %v4063_v24, %v314_v26 }
 0x225   :  { %v332_v30 = vsel %vm241_vm1, %v5001_v28, 0.0 }
 0x226   :  { %v329_v29 = vsel %vm241_vm1, %v4999_v27, 0.0 }
 0x227   :  { %330 = vadd.xlane.f32.xlu0 %v329_v29 }
 0x22b   :  { %333 = vadd.xlane.f32.xlu0 %v332_v30 }
 0x2b4   :  { %v331_v31 = vpop.xlane.xlu0 %330 }
 0x2b5   :  { %v336_v32 = vmul.f32 0.03125, %v331_v31 }
 0x2b7   :  { %v338_v33 = vsub.f32 %v4999_v27, %v336_v32 }
 0x2b8   :  { %v334_v34 = vpop.xlane.xlu0 %333 }
 0x2b9   :  { %v337_v35 = vmul.f32 0.03125, %v334_v34  ;;  %v340_v36 = vmul.f32 %v338_v33, %v338_v33 }
 0x2bb   :  { %v339_v37 = vsub.f32 %v5001_v28, %v337_v35  ;;  %v342_v38 = vsel %vm241_vm1, %v340_v36, 0.0  ;;  %v466_v36 = vld [vmem:[#allocation13] sm:$0xff] }
 0x2bc   :  { %343 = vadd.xlane.f32.xlu1 %v342_v38 }
 0x2bd   :  { %v341_v39 = vmul.f32 %v339_v37, %v339_v37 }
 0x2bf   :  { %v345_v40 = vsel %vm241_vm1, %v341_v39, 0.0 }
 0x2c0   :  { %346 = vadd.xlane.f32.xlu1 %v345_v40 }
 0x349   :  { %v344_v47 = vpop.xlane.xlu1 %343 }
 0x34a   :  { %v348_v48 = vmul.f32 0.03125, %v344_v47 }
 0x34c   :  { %v350_v49 = vadd.f32 1e-05, %v348_v48 }
 0x34d   :  { %v347_v50 = vpop.xlane.xlu1 %346 }
 0x34e   :  { %4565 = vrsqrt.f32 %v350_v49  ;;  %v349_v51 = vmul.f32 0.03125, %v347_v50 }
 0x350   :  { %v351_v52 = vadd.f32 1e-05, %v349_v51 }
 0x352   :  { %4567 = vrsqrt.f32 %v351_v52 }
 0x358   :  { %v4566_v53 = vpop.eup %4565 }
 0x359   :  { %v354_v55 = vmul.f32 %v4566_v53, %v338_v33 }
 0x35b   :  { %v363_v57 = vmul.f32 %v4066_v54, %v354_v55 }
 0x35c   :  { %v4568_v58 = vpop.eup %4567 }
 0x35d   :  { %v355_v59 = vmul.f32 %v4568_v58, %v339_v37  ;;  %v372_v60 = vadd.f32 %v4067_v56, %v363_v57 }
 0x35f   :  { %v364_v61 = vmul.f32 %v4066_v54, %v355_v59  ;;  %4282 = vmatprep.mubr.msk.f32.mxu0 %vm241_vm1, %v372_v60 }
 0x361   :  { %v373_v62 = vadd.f32 %v4067_v56, %v364_v61 }
 0x363   :  { %4283 = vmatmul.mubr.msk.f32.vlgmr.msra.gmra.mrb[2].mxu0 %vm241_vm1, %v373_v62 }
 0x364   :  { %4292 = vmatprep.mubr.msk.f32.mxu0 %vm4810_vm2, %v4809_v63 }
 0x436   :  { %v4284_v1 = vpop.f32.mrb[2].mxu0 }
 0x437   :  { %v5028_v2 = vadd.f32 %v4284_v1, %v4068_v0  ;;  %v457_v3 = vpop.f32.mrb[3].mxu0 }
 0x438   :  { %v5030_v4 = vadd.f32 %v4068_v0, %v457_v3 }
 0x439   :  { %558 = vrot.lane.b32.xlu1 %v5028_v2, %s4811_s15 }
 0x43a   :  { %480 = vrot.lane.b32.xlu0 %v5030_v4, %s4811_s15 }
 0x4ab   :  { %v559_v5 = vpop.permute.xlu1 %558 }
 0x4ac   :  { %4291 = vmatpush3.xpose.msk.msra.mxu0 %vm482_vm3, %v559_v5  ;;  %v481_v6 = vpop.permute.xlu0 %480 }
 0x4ad   :  { %4286 = vmatpush3.xpose.msk.msra.mxu1 %vm482_vm3, %v481_v6  ;;  %4300 = vmatprep.subr.mxu0 %v4809_v63 }
 0x4ae   :  { %4295 = vmatprep.subr.mxu1 %v4809_v63 }
 0x4af   :  { %4293 = vmatmul.mubr.msk.f32.vlgmr.msra.gmra.mrb[4].mxu0 %vm482_vm3, %v5028_v2 }
 0x4b0   :  { %4288 = vmatmul.mubr.msk.f32.vlgmr.msra.gmra.mrb[2].mxu1 %vm482_vm3, %v5030_v4  ;;  %4302 = vmatprep.mubr.msk.f32.mxu0 %vm4810_vm2, %v4809_v63 }
 0x4b1   :  { %4297 = vmatprep.mubr.msk.f32.mxu1 %vm4810_vm2, %v4809_v63 }
 0x582   :  { %v630_v10 = vpop.f32.mrb[4].mxu0 }
 0x583   :  { %v635_v12 = vmul.f32 0.35355338, %v630_v10  ;;  %v553_v13 = vpop.f32.mrb[2].mxu1  ;;  %v4294_v14 = vpop.f32.mrb[5].mxu0 }
 0x584   :  { %v634_v15 = vmul.f32 0.35355338, %v553_v13  ;;  %v4289_v16 = vpop.f32.mrb[3].mxu1 }
 0x585   :  { %v637_v17 = vadd.f32 %v635_v12, %v5049_v11 }
 0x586   :  { %v636_v18 = vadd.f32 %v634_v15, %v5049_v11 }
 0x587   :  { %v641_v19 = vsel %vm482_vm3, %v637_v17, -inf }
 0x588   :  { %642 = vmax.xlane.f32.xlu0 %v641_v19  ;;  %v638_v20 = vsel %vm482_vm3, %v636_v18, -inf }
 0x589   :  { %639 = vmax.xlane.f32.xlu1 %v638_v20 }
 0x615   :  { %v643_v21 = vpop.xlane.xlu0 %642 }
 0x616   :  { %v645_v22 = vsub.f32 %v637_v17, %v643_v21  ;;  %v640_v23 = vpop.xlane.xlu1 %639 }
 0x617   :  { %v644_v24 = vsub.f32 %v636_v18, %v640_v23 }
 0x618   :  { %v648_v25 = vmul.f32 1.442695, %v645_v22 }
 0x619   :  { %v646_v26 = vmul.f32 1.442695, %v644_v24 }
 0x61a   :  { %4569 = vpow2.f32 %v648_v25 }
 0x61b   :  { %4571 = vpow2.f32 %v646_v26 }
 0x624   :  { %v4570_v29 = vpop.eup %4569 }
 0x625   :  { %v4572_v30 = vpop.eup %4571  ;;  %v653_v31 = vsel %vm482_vm3, %v4570_v29, 0.0 }
 0x626   :  { %654 = vadd.xlane.f32.xlu1 %v653_v31  ;;  %v650_v32 = vsel %vm482_vm3, %v4572_v30, 0.0 }
 0x627   :  { %651 = vadd.xlane.f32.xlu0 %v650_v32 }
 0x637   :  { %738 = vrot.lane.b32.xlu1 %v5028_v2, %s4812_s2 }
 0x63b   :  { %899 = vrot.lane.b32.xlu1 %v5030_v4, %s4813_s24 }
 0x63d   :  { %662 = vrot.lane.b32.xlu0 %v5030_v4, %s4812_s2 }
 0x63f   :  { %897 = vrot.lane.b32.xlu1 %v5030_v4, %s4814_s17 }
 0x641   :  { %977 = vrot.lane.b32.xlu0 %v5028_v2, %s4813_s24 }
 0x643   :  { %975 = vrot.lane.b32.xlu1 %v5028_v2, %s4814_s17 }
 0x647   :  { %1325 = vrot.lane.b32.xlu1 %v5030_v4, %s4815_s18 }
 0x6b3   :  { %v655_v33 = vpop.xlane.xlu1 %654 }
 0x6b4   :  { %4573 = vrcp.f32 %v655_v33  ;;  %v652_v34 = vpop.xlane.xlu0 %651 }
 0x6b5   :  { %4575 = vrcp.f32 %v652_v34 }
 0x6b7   :  { %v739_v35 = vpop.permute.xlu1 %738 }
 0x6b8   :  { %4301 = vmatpush3.msra.mxu0 %v739_v35  ;;  %v663_v37 = vpop.permute.xlu0 %662 }
 0x6b9   :  { %4296 = vmatpush3.msra.mxu1 %v663_v37  ;;  %4310 = vmatprep.subr.mxu0 %v4809_v63  ;;  %v467_v37 = vld [vmem:[#allocation13 + $0x8] sm:$0xff] }
 0x6ba   :  { %4305 = vmatprep.subr.mxu1 %v466_v36 }
 0x6bb   :  { %v900_v39 = vpop.permute.xlu1 %899 }
 0x6bc   :  { %v978_v48 = vpop.permute.xlu0 %977 }
 0x6be   :  { %v4574_v38 = vpop.eup %4573 }
 0x6bf   :  { %v4576_v40 = vpop.eup %4575  ;;  %v659_v41 = vmul.f32 %v4574_v38, %v4570_v29  ;;  %v898_v43 = vpop.permute.xlu1 %897 }
 0x6c0   :  { %v658_v42 = vmul.f32 %v4576_v40, %v4572_v30 }
 0x6c1   :  { %661 = vst.msk [vmem:[%s5517_s14 + $0x8] sm:$0xff] %vm482_vm3, %v659_v41  ;;  %4303 = vmatmul.mubr.msk.f32.vlgmr.msra.gmra.mrb[6].mxu0 %vm482_vm3, %v659_v41 }
 0x6c2   :  { %660 = vst.msk [vmem:[%s5517_s14] sm:$0xff] %vm482_vm3, %v658_v42  ;;  %4311 = vmatpush3.xpose.msk.msra.mxu0 %vm482_vm3, %v900_v39  ;;  %4298 = vmatmul.mubr.msk.f32.vlgmr.msra.gmra.mrb[4].mxu1 %vm482_vm3, %v658_v42 }
 0x6c3   :  { %4312 = vmatprep.mubr.msk.f32.mxu0 %vm4810_vm2, %v4809_v63  ;;  %4306 = vmatpush3.msra.mxu1 %v466_v36  ;;  %v976_v52 = vpop.permute.xlu1 %975 }
 0x6c4   :  { %4315 = vmatprep.subr.mxu1 %v4809_v63  ;;  %4320 = vmatprep.subr.mxu0 %v4809_v63 }
 0x6c5   :  { %4313 = vmatmul.mubr.msk.f32.vlgmr.msra.gmra.mrb[8].mxu0 %vm482_vm3, %v898_v43 }
 0x6c6   :  { %4322 = vmatprep.mubr.msk.f32.mxu0 %vm4810_vm2, %v4809_v63 }
 0x6c7   :  { %v1326_v5 = vpop.permute.xlu1 %1325 }
 0x794   :  { %v810_v44 = vpop.f32.mrb[6].mxu0 }
 0x795   :  { %v734_v45 = vpop.f32.mrb[4].mxu1  ;;  %v4304_v46 = vpop.f32.mrb[7].mxu0 }
 0x796   :  { %v4299_v47 = vpop.f32.mrb[5].mxu1  ;;  %4307 = vmatprep.mubr.msk.f32.mxu1 %vm482_vm3, %v734_v45 }
 0x797   :  { %4308 = vmatmul.mubr.msk.f32.vlgmr.msra.gmra.mrb[6].mxu1 %vm482_vm3, %v810_v44 }
 0x798   :  { %4316 = vmatpush3.xpose.msk.msra.mxu1 %vm482_vm3, %v978_v48  ;;  %v971_v49 = vpop.f32.mrb[8].mxu0  ;;  %4317 = vmatprep.mubr.msk.f32.mxu1 %vm4810_vm2, %v4809_v63 }
 0x799   :  { %v1053_v50 = vmul.f32 0.35355338, %v971_v49  ;;  %v4314_v51 = vpop.f32.mrb[9].mxu0  ;;  %4325 = vmatprep.subr.mxu1 %v4809_v63 }
 0x79b   :  { %4318 = vmatmul.mubr.msk.f32.vlgmr.msra.gmra.mrb[8].mxu1 %vm482_vm3, %v976_v52  ;;  %v1055_v53 = vadd.f32 %v1053_v50, %v5049_v11  ;;  %v468_v52 = vld [vmem:[#allocation13 + $0x10] sm:$0xff] }
 0x79c   :  { %4327 = vmatprep.mubr.msk.f32.mxu1 %vm4810_vm2, %v4809_v63 }
 0x79d   :  { %v1057_v54 = vsel %vm482_vm3, %v1055_v53, -inf }
 0x79e   :  { %1058 = vmax.xlane.f32.xlu0 %v1057_v54 }
 0x7b4   :  { %1090 = vrot.lane.b32.xlu0 %v5030_v4, %s4816_s21 }
 0x7b8   :  { %1323 = vrot.lane.b32.xlu0 %v5030_v4, %s4817_s4 }
 0x7bc   :  { %1401 = vrot.lane.b32.xlu0 %v5028_v2, %s4817_s4 }
 0x82b   :  { %v1059_v55 = vpop.xlane.xlu0 %1058 }
 0x82c   :  { %v1063_v56 = vsub.f32 %v1055_v53, %v1059_v55 }
 0x82e   :  { %v1065_v57 = vmul.f32 1.442695, %v1063_v56 }
 0x82f   :  { %v1091_v58 = vpop.permute.xlu0 %1090 }
 0x830   :  { %4577 = vpow2.f32 %v1065_v57  ;;  %4321 = vmatpush3.msra.mxu0 %v1091_v58 }
 0x831   :  { %4335 = vmatprep.subr.mxu0 %v4809_v63 }
 0x833   :  { %v1324_v9 = vpop.permute.xlu0 %1323 }
 0x837   :  { %v1402_v12 = vpop.permute.xlu0 %1401 }
 0x83a   :  { %v4578_v59 = vpop.eup %4577 }
 0x83b   :  { %v1069_v60 = vsel %vm482_vm3, %v4578_v59, 0.0 }
 0x83c   :  { %1070 = vadd.xlane.f32.xlu1 %v1069_v60 }
 0x84d   :  { %1403 = vrot.lane.b32.xlu1 %v5028_v2, %s4815_s18 }
 0x86e   :  { %v1049_v61 = vpop.f32.mrb[8].mxu1 }
 0x86f   :  { %v1054_v62 = vmul.f32 0.35355338, %v1049_v61  ;;  %v4319_v0 = vpop.f32.mrb[9].mxu1 }
 0x871   :  { %v1056_v1 = vadd.f32 %v1054_v62, %v5049_v11 }
 0x873   :  { %v1060_v3 = vsel %vm482_vm3, %v1056_v1, -inf }
 0x874   :  { %1061 = vmax.xlane.f32.xlu1 %v1060_v3 }
 0x8c9   :  { %v1071_v6 = vpop.xlane.xlu1 %1070 }
 0x8ca   :  { %4579 = vrcp.f32 %v1071_v6 }
 0x8cd   :  { %v1404_v10 = vpop.permute.xlu1 %1403 }
 0x8d4   :  { %v4580_v7 = vpop.eup %4579 }
 0x8d5   :  { %v5113_v8 = vmul.f32 %v4580_v7, %v4578_v59 }
 0x8d7   :  { %4323 = vmatmul.mubr.msk.f32.vlgmr.msra.gmra.mrb[10].mxu0 %vm482_vm3, %v5113_v8 }
 0x8d8   :  { %4336 = vmatpush3.xpose.msk.msra.mxu0 %vm482_vm3, %v1326_v5  ;;  %4337 = vmatprep.mubr.msk.f32.mxu0 %vm4810_vm2, %v4809_v63 }
 0x8d9   :  { %4340 = vmatprep.subr.mxu0 %v4809_v63 }
 0x8db   :  { %4338 = vmatmul.mubr.msk.f32.vlgmr.msra.gmra.mrb[12].mxu0 %vm482_vm3, %v1324_v9 }
 0x8dc   :  { %4341 = vmatpush3.xpose.msk.msra.mxu0 %vm482_vm3, %v1404_v10  ;;  %4342 = vmatprep.mubr.msk.f32.mxu0 %vm4810_vm2, %v4809_v63 }
 0x8dd   :  { %4350 = vmatprep.subr.mxu0 %v4809_v63 }
 0x8df   :  { %4343 = vmatmul.mubr.msk.f32.vlgmr.msra.gmra.mrb[14].mxu0 %vm482_vm3, %v1402_v12 }
 0x8e0   :  { %4352 = vmatprep.mubr.msk.f32.mxu0 %vm4810_vm2, %v4809_v63 }
 0x901   :  { %v1062_v13 = vpop.xlane.xlu1 %1061 }
 0x902   :  { %v1064_v14 = vsub.f32 %v1056_v1, %v1062_v13 }
 0x904   :  { %v1067_v15 = vmul.f32 1.442695, %v1064_v14 }
 0x906   :  { %4581 = vpow2.f32 %v1067_v15 }
 0x910   :  { %v4582_v16 = vpop.eup %4581 }
 0x911   :  { %v1072_v17 = vsel %vm482_vm3, %v4582_v16, 0.0 }
 0x912   :  { %1073 = vadd.xlane.f32.xlu0 %v1072_v17 }
 0x928   :  { %1165 = vrot.lane.b32.xlu0 %v5028_v2, %s4816_s21 }
 0x92c   :  { %1591 = vrot.lane.b32.xlu0 %v5028_v2, %s4818_s23 }
 0x930   :  { %1751 = vrot.lane.b32.xlu0 %v5030_v4, %s4819_s25 }
 0x934   :  { %1829 = vrot.lane.b32.xlu0 %v5028_v2, %s4819_s25 }
 0x938   :  { %1749 = vrot.lane.b32.xlu0 %v5030_v4, %s4820_s26 }
 0x99f   :  { %v1074_v18 = vpop.xlane.xlu0 %1073 }
 0x9a0   :  { %4583 = vrcp.f32 %v1074_v18 }
 0x9a3   :  { %v1166_v19 = vpop.permute.xlu0 %1165 }
 0x9a4   :  { %4326 = vmatpush3.msra.mxu1 %v1166_v19 }
 0x9a5   :  { %4330 = vmatprep.subr.mxu1 %v467_v37 }
 0x9a7   :  { %v1592_v20 = vpop.permute.xlu0 %1591 }
 0x9a8   :  { %4351 = vmatpush3.msra.mxu0 %v1592_v20 }
 0x9a9   :  { %4360 = vmatprep.subr.mxu0 %v4809_v63 }
 0x9aa   :  { %v4584_v21 = vpop.eup %4583  ;;  %v1161_v22 = vpop.f32.mrb[10].mxu0 }
 0x9ab   :  { %v5141_v23 = vmul.f32 %v4584_v21, %v4582_v16  ;;  %v4324_v24 = vpop.f32.mrb[11].mxu0  ;;  %v1752_v54 = vpop.permute.xlu0 %1751 }
 0x9ad   :  { %4328 = vmatmul.mubr.msk.f32.vlgmr.msra.gmra.mrb[10].mxu1 %vm482_vm3, %v5141_v23 }
 0x9ae   :  { %4332 = vmatprep.mubr.msk.f32.mxu1 %vm482_vm3, %v1161_v22  ;;  %v1397_v25 = vpop.f32.mrb[12].mxu0  ;;  %4331 = vmatpush3.msra.mxu1 %v467_v37  ;;  %v469_v37 = vld [vmem:[#allocation13 + $0x18] sm:$0xff] }
 0x9af   :  { %v1479_v26 = vmul.f32 0.35355338, %v1397_v25  ;;  %v4339_v29 = vpop.f32.mrb[13].mxu0  ;;  %4345 = vmatprep.subr.mxu1 %v4809_v63  ;;  %v1830_v58 = vpop.permute.xlu0 %1829 }
 0x9b1   :  { %v1481_v30 = vadd.f32 %v1479_v26, %v5049_v11 }
 0x9b2   :  { %v1475_v31 = vpop.f32.mrb[14].mxu0 }
 0x9b3   :  { %v1480_v32 = vmul.f32 0.35355338, %v1475_v31  ;;  %v4344_v33 = vpop.f32.mrb[15].mxu0  ;;  %v1483_v34 = vsel %vm482_vm3, %v1481_v30, -inf  ;;  %v1750_v60 = vpop.permute.xlu0 %1749 }
 0x9b4   :  { %1484 = vmax.xlane.f32.xlu1 %v1483_v34 }
 0x9b5   :  { %v1482_v35 = vadd.f32 %v1480_v32, %v5049_v11 }
 0x9b7   :  { %v1486_v36 = vsel %vm482_vm3, %v1482_v35, -inf }
 0x9b8   :  { %1487 = vmax.xlane.f32.xlu1 %v1486_v36 }
 0xa41   :  { %v1485_v38 = vpop.xlane.xlu1 %1484 }
 0xa42   :  { %v1489_v39 = vsub.f32 %v1481_v30, %v1485_v38 }
 0xa44   :  { %v1491_v40 = vmul.f32 1.442695, %v1489_v39 }
 0xa45   :  { %v1488_v41 = vpop.xlane.xlu1 %1487 }
 0xa46   :  { %4585 = vpow2.f32 %v1491_v40  ;;  %v1490_v42 = vsub.f32 %v1482_v35, %v1488_v41  ;;  %v4071_v41 = vld [vmem:[%s5515_s12] ss:$0 sm:$0xff] }
 0xa48   :  { %v1493_v43 = vmul.f32 1.442695, %v1490_v42  ;;  %v478_v42 = vadd.f32 %v4071_v41, %v5001_v28 }
 0xa4a   :  { %4587 = vpow2.f32 %v1493_v43 }
 0xa50   :  { %v4586_v44 = vpop.eup %4585 }
 0xa51   :  { %v1495_v45 = vsel %vm482_vm3, %v4586_v44, 0.0 }
 0xa52   :  { %1496 = vadd.xlane.f32.xlu1 %v1495_v45 }
 0xa54   :  { %v4588_v46 = vpop.eup %4587 }
 0xa55   :  { %v1498_v47 = vsel %vm482_vm3, %v4588_v46, 0.0 }
 0xa56   :  { %1499 = vadd.xlane.f32.xlu1 %v1498_v47 }
 0xa67   :  { %1516 = vrot.lane.b32.xlu1 %v5030_v4, %s4818_s23 }
 0xa6b   :  { %1827 = vrot.lane.b32.xlu1 %v5028_v2, %s4820_s26 }
 0xa80   :  { %v1236_v48 = vpop.f32.mrb[10].mxu1 }
 0xa81   :  { %v4329_v49 = vpop.f32.mrb[11].mxu1  ;;  %4333 = vmatmul.mubr.msk.f32.vlgmr.msra.gmra.mrb[6].mxu1 %vm482_vm3, %v1236_v48 }
 0xa82   :  { %4347 = vmatprep.mubr.msk.f32.mxu1 %vm4810_vm2, %v4809_v63 }
 0xadf   :  { %v1497_v50 = vpop.xlane.xlu1 %1496 }
 0xae0   :  { %4589 = vrcp.f32 %v1497_v50 }
 0xae3   :  { %v1500_v51 = vpop.xlane.xlu1 %1499 }
 0xae4   :  { %4591 = vrcp.f32 %v1500_v51 }
 0xae7   :  { %v1517_v53 = vpop.permute.xlu1 %1516 }
 0xae8   :  { %4346 = vmatpush3.msra.mxu1 %v1517_v53 }
 0xae9   :  { %4355 = vmatprep.subr.mxu1 %v468_v52 }
 0xaea   :  { %v4590_v55 = vpop.eup %4589 }
 0xaeb   :  { %v5160_v56 = vmul.f32 %v4590_v55, %v4586_v44  ;;  %v1828_v3 = vpop.permute.xlu1 %1827  ;;  %v477_v44 = vadd.f32 %v4071_v41, %v4999_v27 }
 0xaed   :  { %4348 = vmatmul.mubr.msk.f32.vlgmr.msra.gmra.mrb[12].mxu1 %vm482_vm3, %v5160_v56 }
 0xaee   :  { %v4592_v57 = vpop.eup %4591  ;;  %4356 = vmatpush3.msra.mxu1 %v468_v52 }
 0xaef   :  { %v5164_v59 = vmul.f32 %v4592_v57, %v4588_v46  ;;  %4365 = vmatprep.subr.mxu1 %v4809_v63 }
 0xaf1   :  { %4353 = vmatmul.mubr.msk.f32.vlgmr.msra.gmra.mrb[16].mxu0 %vm482_vm3, %v5164_v59 }
 0xaf2   :  { %4361 = vmatpush3.xpose.msk.msra.mxu0 %vm482_vm3, %v1752_v54  ;;  %4362 = vmatprep.mubr.msk.f32.mxu0 %vm4810_vm2, %v4809_v63 }
 0xaf3   :  { %4370 = vmatprep.subr.mxu0 %v4809_v63 }
 0xaf5   :  { %4363 = vmatmul.mubr.msk.f32.vlgmr.msra.gmra.mrb[18].mxu0 %vm482_vm3, %v1750_v60 }
 0xaf6   :  { %4372 = vmatprep.mubr.msk.f32.mxu0 %vm4810_vm2, %v4809_v63 }
 0xbc0   :  { %v1587_v61 = vpop.f32.mrb[12].mxu1 }
 0xbc1   :  { %v4349_v62 = vpop.f32.mrb[13].mxu1  ;;  %4357 = vmatprep.mubr.msk.f32.mxu1 %vm482_vm3, %v1587_v61 }
 0xbc2   :  { %v2222_v62 = vld [vmem:[#allocation12 + $0x20] sm:$0xff] }
 0xbc4   :  { %v1662_v0 = vpop.f32.mrb[16].mxu0 }
 0xbc5   :  { %v4354_v1 = vpop.f32.mrb[17].mxu0  ;;  %4358 = vmatmul.mubr.msk.f32.vlgmr.msra.gmra.mrb[6].mxu1 %vm482_vm3, %v1662_v0  ;;  %v2223_v0 = vld [vmem:[#allocation12 + $0x28] sm:$0xff] }
 0xbc6   :  { %4366 = vmatpush3.xpose.msk.msra.mxu1 %vm482_vm3, %v1830_v58  ;;  %4367 = vmatprep.mubr.msk.f32.mxu1 %vm4810_vm2, %v4809_v63  ;;  %v4516_v1 = vpack.c.bf16 %v2223_v0, %v2222_v62  ;;  %v2316_v62 = vld [vmem:[#allocation13 + $0x20] sm:$0xff] }
 0xbc7   :  { %4375 = vmatprep.subr.mxu1 %v4809_v63 }
 0xbc8   :  { %v1823_v5 = vpop.f32.mrb[18].mxu0 }
 0xbc9   :  { %v1905_v6 = vmul.f32 0.35355338, %v1823_v5  ;;  %v4364_v7 = vpop.f32.mrb[19].mxu0  ;;  %4368 = vmatmul.mubr.msk.f32.vlgmr.msra.gmra.mrb[14].mxu1 %vm482_vm3, %v1828_v3  ;;  %v2224_v3 = vld [vmem:[#allocation12 + $0x30] sm:$0xff]  ;;  %v2225_v5 = vld [vmem:[#allocation12 + $0x38] sm:$0xff] }
 0xbca   :  { %4377 = vmatprep.mubr.msk.f32.mxu1 %vm4810_vm2, %v4809_v63 }
 0xbcb   :  { %v1907_v9 = vadd.f32 %v1905_v6, %v5049_v11  ;;  %v4520_v6 = vpack.c.bf16 %v2225_v5, %v2224_v3 }
 0xbcd   :  { %v1909_v10 = vsel %vm482_vm3, %v1907_v9, -inf }
 0xbce   :  { %1910 = vmax.xlane.f32.xlu0 %v1909_v10 }
 0xc5b   :  { %v1911_v12 = vpop.xlane.xlu0 %1910 }
 0xc5c   :  { %v1915_v13 = vsub.f32 %v1907_v9, %v1911_v12 }
 0xc5e   :  { %v1917_v14 = vmul.f32 1.442695, %v1915_v13 }
 0xc60   :  { %4593 = vpow2.f32 %v1917_v14 }
 0xc6a   :  { %v4594_v15 = vpop.eup %4593 }
 0xc6b   :  { %v1921_v16 = vsel %vm482_vm3, %v4594_v15, 0.0 }
 0xc6c   :  { %1922 = vadd.xlane.f32.xlu0 %v1921_v16  ;;  %v4105_v16 = vld [vmem:[%s5510_s7 + $0x1] ss:$0 sm:$0xff] }
 0xc9c   :  { %v1901_v17 = vpop.f32.mrb[14].mxu1 }
 0xc9d   :  { %v1906_v18 = vmul.f32 0.35355338, %v1901_v17  ;;  %v4369_v19 = vpop.f32.mrb[15].mxu1 }
 0xc9f   :  { %v1908_v20 = vadd.f32 %v1906_v18, %v5049_v11 }
 0xca1   :  { %v1912_v21 = vsel %vm482_vm3, %v1908_v20, -inf }
 0xca2   :  { %1913 = vmax.xlane.f32.xlu1 %v1912_v21  ;;  %v4107_v21 = vld [vmem:[%s5511_s8 + $0x1] ss:$0 sm:$0xff]  ;;  %s4822_s8 = smov 16  }
 0xcb3   :  { %2017 = vrot.lane.b32.xlu1 %v5028_v2, %s4821_s5 }
 0xcf9   :  { %v1923_v31 = vpop.xlane.xlu0 %1922 }
 0xd2f   :  { %v1914_v22 = vpop.xlane.xlu1 %1913 }
 0xd30   :  { %v1916_v24 = vsub.f32 %v1908_v20, %v1914_v22 }
 0xd32   :  { %v1919_v25 = vmul.f32 1.442695, %v1916_v24 }
 0xd33   :  { %v2018_v26 = vpop.permute.xlu1 %2017 }
 0xd34   :  { %4595 = vpow2.f32 %v1919_v25  ;;  %4376 = vmatpush3.msra.mxu1 %v2018_v26  ;;  %v4109_v26 = vld [vmem:[%s5513_s10 + $0x1] ss:$0 sm:$0xff]  ;;  %s4823_s10 = smov 24  }
 0xd35   :  { %4597 = vrcp.f32 %v1923_v31  ;;  %4380 = vmatprep.subr.mxu1 %v469_v37 }
 0xd3e   :  { %v4596_v29 = vpop.eup %4595 }
 0xd3f   :  { %v1924_v30 = vsel %vm482_vm3, %v4596_v29, 0.0  ;;  %v4598_v33 = vpop.eup %4597 }
 0xd40   :  { %1925 = vadd.xlane.f32.xlu0 %v1924_v30  ;;  %v5195_v34 = vmul.f32 %v4598_v33, %v4594_v15 }
 0xd56   :  { %1942 = vrot.lane.b32.xlu0 %v5030_v4, %s4821_s5 }
 0xdcd   :  { %v1926_v32 = vpop.xlane.xlu0 %1925 }
 0xdce   :  { %4599 = vrcp.f32 %v1926_v32 }
 0xdd1   :  { %v1943_v2 = vpop.permute.xlu0 %1942 }
 0xdd2   :  { %4371 = vmatpush3.msra.mxu0 %v1943_v2 }
 0xdd3   :  { %4373 = vmatmul.mubr.msk.f32.vlgmr.msra.gmra.mrb[20].mxu0 %vm482_vm3, %v5195_v34  ;;  %4517 = vmatprep.subr.bf16.mxu0 %v4516_v1 }
 0xdd4   :  { %4519 = vmatpush3.bf16.msra.mxu0 %v4516_v1 }
 0xdd5   :  { %4521 = vmatprep.subr.bf16.mxu0 %v4520_v6 }
 0xdd8   :  { %v4600_v35 = vpop.eup %4599  ;;  %4523 = vmatpush3.bf16.msra.mxu0 %v4520_v6 }
 0xdd9   :  { %v5199_v36 = vmul.f32 %v4600_v35, %v4596_v29  ;;  %4401 = vmatprep.subr.mxu0 %v4809_v63 }
 0xddb   :  { %4378 = vmatmul.mubr.msk.f32.vlgmr.msra.gmra.mrb[16].mxu1 %vm482_vm3, %v5199_v36 }
 0xddc   :  { %4381 = vmatpush3.msra.mxu1 %v469_v37 }
 0xddd   :  { %4396 = vmatprep.subr.mxu1 %v4809_v63 }
 0xea6   :  { %v2013_v4 = vpop.f32.mrb[20].mxu0 }
 0xea7   :  { %v4374_v38 = vpop.f32.mrb[21].mxu0  ;;  %4382 = vmatprep.mubr.msk.f32.mxu1 %vm482_vm3, %v2013_v4 }
 0xeae   :  { %v2088_v39 = vpop.f32.mrb[16].mxu1 }
 0xeaf   :  { %v4379_v40 = vpop.f32.mrb[17].mxu1  ;;  %4383 = vmatmul.mubr.msk.f32.vlgmr.msra.gmra.mrb[6].mxu1 %vm482_vm3, %v2088_v39 }
 0xeb0   :  { %4398 = vmatprep.mubr.msk.f32.mxu1 %vm4810_vm2, %v4809_v63 }
 0xf82   :  { %v4384_v43 = vpop.f32.mrb[6].mxu1 }
 0xf83   :  { %v5213_v45 = vadd.f32 %v4384_v43, %v478_v42  ;;  %v2164_v46 = vpop.f32.mrb[7].mxu1 }
 0xf84   :  { %v5215_v47 = vadd.f32 %v2164_v46, %v477_v44 }
 0xf85   :  { %v2178_v48 = vsel %vm241_vm1, %v5213_v45, 0.0 }
 0xf86   :  { %2179 = vadd.xlane.f32.xlu0 %v2178_v48  ;;  %v2175_v49 = vsel %vm241_vm1, %v5215_v47, 0.0 }
 0xf87   :  { %2176 = vadd.xlane.f32.xlu1 %v2175_v49 }
0x1013   :  { %v2180_v50 = vpop.xlane.xlu0 %2179 }
0x1014   :  { %v2182_v51 = vmul.f32 0.03125, %v2180_v50  ;;  %v2177_v52 = vpop.xlane.xlu1 %2176 }
0x1015   :  { %v2181_v53 = vmul.f32 0.03125, %v2177_v52 }
0x1016   :  { %v2184_v54 = vsub.f32 %v5213_v45, %v2182_v51 }
0x1017   :  { %v2183_v55 = vsub.f32 %v5215_v47, %v2181_v53 }
0x1018   :  { %v2186_v57 = vmul.f32 %v2184_v54, %v2184_v54 }
0x1019   :  { %v2185_v58 = vmul.f32 %v2183_v55, %v2183_v55 }
0x101a   :  { %v2190_v60 = vsel %vm241_vm1, %v2186_v57, 0.0 }
0x101b   :  { %2191 = vadd.xlane.f32.xlu1 %v2190_v60  ;;  %v2187_v61 = vsel %vm241_vm1, %v2185_v58, 0.0 }
0x101c   :  { %2188 = vadd.xlane.f32.xlu0 %v2187_v61 }
0x10a8   :  { %v2192_v7 = vpop.xlane.xlu1 %2191 }
0x10a9   :  { %v2194_v9 = vmul.f32 0.03125, %v2192_v7  ;;  %v2189_v10 = vpop.xlane.xlu0 %2188 }
0x10aa   :  { %v2193_v12 = vmul.f32 0.03125, %v2189_v10 }
0x10ab   :  { %v2196_v13 = vadd.f32 1e-05, %v2194_v9 }
0x10ac   :  { %v2195_v14 = vadd.f32 1e-05, %v2193_v12 }
0x10ad   :  { %4601 = vrsqrt.f32 %v2196_v13 }
0x10ae   :  { %4603 = vrsqrt.f32 %v2195_v14 }
0x10b7   :  { %v4602_v15 = vpop.eup %4601 }
0x10b8   :  { %v4604_v17 = vpop.eup %4603  ;;  %v2200_v18 = vmul.f32 %v4602_v15, %v2184_v54 }
0x10b9   :  { %v2199_v19 = vmul.f32 %v4604_v17, %v2183_v55 }
0x10ba   :  { %v2210_v20 = vmul.f32 %v4105_v16, %v2200_v18 }
0x10bb   :  { %v2209_v22 = vmul.f32 %v4105_v16, %v2199_v19 }
0x10bc   :  { %v2220_v25 = vadd.f32 %v4107_v21, %v2210_v20 }
0x10bd   :  { %v2219_v24 = vadd.f32 %v4107_v21, %v2209_v22 }
0x10bf   :  { %4393 = vmatprep.mubr.msk.f32.mxu0 %vm241_vm1, %v2219_v24 }
0x10c0   :  { %4394 = vmatmul.mubr.msk.f32.vlgmr.msra.gmra.mrb[22].mxu0 %vm241_vm1, %v2220_v25 }
0x10c1   :  { %4403 = vmatprep.mubr.msk.f32.mxu0 %vm4810_vm2, %v4809_v63 }
0x1193   :  { %v4395_v29 = vpop.f32.mrb[22].mxu0 }
0x1194   :  { %v5239_v30 = vadd.f32 %v4395_v29, %v4109_v26  ;;  %v2306_v31 = vpop.f32.mrb[23].mxu0 }
0x1195   :  { %v5241_v32 = vadd.f32 %v4109_v26, %v2306_v31 }
0x1196   :  { %2408 = vrot.lane.b32.xlu1 %v5239_v30, %s4811_s15 }
0x1197   :  { %2331 = vrot.lane.b32.xlu0 %v5241_v32, %s4811_s15 }
0x1208   :  { %v2409_v33 = vpop.permute.xlu1 %2408 }
0x1209   :  { %4402 = vmatpush3.xpose.msk.msra.mxu0 %vm482_vm3, %v2409_v33  ;;  %v2332_v2 = vpop.permute.xlu0 %2331 }
0x120a   :  { %4397 = vmatpush3.xpose.msk.msra.mxu1 %vm482_vm3, %v2332_v2  ;;  %4411 = vmatprep.subr.mxu0 %v4809_v63 }
0x120b   :  { %4406 = vmatprep.subr.mxu1 %v4809_v63 }
0x120c   :  { %4404 = vmatmul.mubr.msk.f32.vlgmr.msra.gmra.mrb[24].mxu0 %vm482_vm3, %v5239_v30 }
0x120d   :  { %4399 = vmatmul.mubr.msk.f32.vlgmr.msra.gmra.mrb[18].mxu1 %vm482_vm3, %v5241_v32  ;;  %4413 = vmatprep.mubr.msk.f32.mxu0 %vm4810_vm2, %v4809_v63 }
0x120e   :  { %4408 = vmatprep.mubr.msk.f32.mxu1 %vm4810_vm2, %v4809_v63 }
0x12df   :  { %v2480_v35 = vpop.f32.mrb[24].mxu0 }
0x12e0   :  { %v2485_v37 = vmul.f32 0.35355338, %v2480_v35  ;;  %v2403_v4 = vpop.f32.mrb[18].mxu1  ;;  %v4405_v38 = vpop.f32.mrb[25].mxu0 }
0x12e1   :  { %v2484_v39 = vmul.f32 0.35355338, %v2403_v4  ;;  %v4400_v40 = vpop.f32.mrb[19].mxu1 }
0x12e2   :  { %v2487_v41 = vadd.f32 %v2485_v37, %v5049_v11 }
0x12e3   :  { %v2486_v42 = vadd.f32 %v2484_v39, %v5049_v11 }
0x12e4   :  { %v2491_v43 = vsel %vm482_vm3, %v2487_v41, -inf }
0x12e5   :  { %2492 = vmax.xlane.f32.xlu0 %v2491_v43  ;;  %v2488_v44 = vsel %vm482_vm3, %v2486_v42, -inf }
0x12e6   :  { %2489 = vmax.xlane.f32.xlu1 %v2488_v44 }
0x1372   :  { %v2493_v46 = vpop.xlane.xlu0 %2492 }
0x1373   :  { %v2495_v48 = vsub.f32 %v2487_v41, %v2493_v46  ;;  %v2490_v49 = vpop.xlane.xlu1 %2489 }
0x1374   :  { %v2494_v50 = vsub.f32 %v2486_v42, %v2490_v49 }
0x1375   :  { %v2498_v51 = vmul.f32 1.442695, %v2495_v48 }
0x1376   :  { %v2496_v52 = vmul.f32 1.442695, %v2494_v50 }
0x1377   :  { %4605 = vpow2.f32 %v2498_v51 }
0x1378   :  { %4607 = vpow2.f32 %v2496_v52 }
0x1381   :  { %v4606_v53 = vpop.eup %4605 }
0x1382   :  { %v4608_v54 = vpop.eup %4607  ;;  %v2503_v55 = vsel %vm482_vm3, %v4606_v53, 0.0 }
0x1383   :  { %2504 = vadd.xlane.f32.xlu1 %v2503_v55  ;;  %v2500_v57 = vsel %vm482_vm3, %v4608_v54, 0.0 }
0x1384   :  { %2501 = vadd.xlane.f32.xlu0 %v2500_v57 }
0x1394   :  { %2596 = vrot.lane.b32.xlu1 %v5239_v30, %s4812_s2 }
0x1398   :  { %2756 = vrot.lane.b32.xlu1 %v5241_v32, %s4813_s24 }
0x139a   :  { %2521 = vrot.lane.b32.xlu0 %v5241_v32, %s4812_s2 }
0x139c   :  { %2754 = vrot.lane.b32.xlu1 %v5241_v32, %s4814_s17 }
0x139e   :  { %2834 = vrot.lane.b32.xlu0 %v5239_v30, %s4813_s24 }
0x13a0   :  { %2832 = vrot.lane.b32.xlu1 %v5239_v30, %s4814_s17 }
0x13a4   :  { %3182 = vrot.lane.b32.xlu1 %v5241_v32, %s4815_s18 }
0x1410   :  { %v2505_v58 = vpop.xlane.xlu1 %2504 }
0x1411   :  { %4609 = vrcp.f32 %v2505_v58  ;;  %v2502_v60 = vpop.xlane.xlu0 %2501 }
0x1412   :  { %4611 = vrcp.f32 %v2502_v60 }
0x1414   :  { %v2597_v61 = vpop.permute.xlu1 %2596 }
0x1415   :  { %4412 = vmatpush3.msra.mxu0 %v2597_v61  ;;  %v2522_v0 = vpop.permute.xlu0 %2521 }
0x1416   :  { %4407 = vmatpush3.msra.mxu1 %v2522_v0  ;;  %4421 = vmatprep.subr.mxu0 %v4809_v63 }
0x1417   :  { %4416 = vmatprep.subr.mxu1 %v2316_v62 }
0x1418   :  { %v2757_v3 = vpop.permute.xlu1 %2756 }
0x1419   :  { %v2835_v15 = vpop.permute.xlu0 %2834 }
0x141b   :  { %v4610_v1 = vpop.eup %4609 }
0x141c   :  { %v4612_v5 = vpop.eup %4611  ;;  %v5280_v6 = vmul.f32 %v4610_v1, %v4606_v53  ;;  %v2755_v9 = vpop.permute.xlu1 %2754 }
0x141d   :  { %v5282_v7 = vmul.f32 %v4612_v5, %v4608_v54 }
0x141e   :  { %4414 = vmatmul.mubr.msk.f32.vlgmr.msra.gmra.mrb[26].mxu0 %vm482_vm3, %v5280_v6 }
0x141f   :  { %4422 = vmatpush3.xpose.msk.msra.mxu0 %vm482_vm3, %v2757_v3  ;;  %4409 = vmatmul.mubr.msk.f32.vlgmr.msra.gmra.mrb[20].mxu1 %vm482_vm3, %v5282_v7 }
0x1420   :  { %4423 = vmatprep.mubr.msk.f32.mxu0 %vm4810_vm2, %v4809_v63  ;;  %4417 = vmatpush3.msra.mxu1 %v2316_v62  ;;  %v2833_v19 = vpop.permute.xlu1 %2832 }
0x1421   :  { %4426 = vmatprep.subr.mxu1 %v4809_v63  ;;  %4431 = vmatprep.subr.mxu0 %v4809_v63 }
0x1422   :  { %4424 = vmatmul.mubr.msk.f32.vlgmr.msra.gmra.mrb[28].mxu0 %vm482_vm3, %v2755_v9 }
0x1423   :  { %4433 = vmatprep.mubr.msk.f32.mxu0 %vm4810_vm2, %v4809_v63 }
0x1424   :  { %v3183_v38 = vpop.permute.xlu1 %3182 }
0x14f1   :  { %v2667_v10 = vpop.f32.mrb[26].mxu0 }
0x14f2   :  { %v2592_v12 = vpop.f32.mrb[20].mxu1  ;;  %v4415_v13 = vpop.f32.mrb[27].mxu0 }
0x14f3   :  { %v4410_v14 = vpop.f32.mrb[21].mxu1  ;;  %4418 = vmatprep.mubr.msk.f32.mxu1 %vm482_vm3, %v2592_v12 }
0x14f4   :  { %4419 = vmatmul.mubr.msk.f32.vlgmr.msra.gmra.mrb[22].mxu1 %vm482_vm3, %v2667_v10  ;;  %v2317_v14 = vld [vmem:[#allocation13 + $0x28] sm:$0xff] }
0x14f5   :  { %4427 = vmatpush3.xpose.msk.msra.mxu1 %vm482_vm3, %v2835_v15  ;;  %v2828_v16 = vpop.f32.mrb[28].mxu0  ;;  %4428 = vmatprep.mubr.msk.f32.mxu1 %vm4810_vm2, %v4809_v63 }
0x14f6   :  { %v2910_v17 = vmul.f32 0.35355338, %v2828_v16  ;;  %v4425_v18 = vpop.f32.mrb[29].mxu0  ;;  %4436 = vmatprep.subr.mxu1 %v4809_v63 }
0x14f8   :  { %4429 = vmatmul.mubr.msk.f32.vlgmr.msra.gmra.mrb[24].mxu1 %vm482_vm3, %v2833_v19  ;;  %v2912_v20 = vadd.f32 %v2910_v17, %v5049_v11 }
0x14f9   :  { %4438 = vmatprep.mubr.msk.f32.mxu1 %vm4810_vm2, %v4809_v63 }
0x14fa   :  { %v2914_v21 = vsel %vm482_vm3, %v2912_v20, -inf }
0x14fb   :  { %2915 = vmax.xlane.f32.xlu0 %v2914_v21 }
0x1511   :  { %2947 = vrot.lane.b32.xlu0 %v5241_v32, %s4816_s21 }
0x1515   :  { %3180 = vrot.lane.b32.xlu0 %v5241_v32, %s4817_s4 }
0x1519   :  { %3258 = vrot.lane.b32.xlu0 %v5239_v30, %s4817_s4 }
0x1588   :  { %v2916_v22 = vpop.xlane.xlu0 %2915 }
0x1589   :  { %v2920_v24 = vsub.f32 %v2912_v20, %v2916_v22 }
0x158b   :  { %v2922_v25 = vmul.f32 1.442695, %v2920_v24 }
0x158c   :  { %v2948_v26 = vpop.permute.xlu0 %2947 }
0x158d   :  { %4613 = vpow2.f32 %v2922_v25  ;;  %4432 = vmatpush3.msra.mxu0 %v2948_v26 }
0x158e   :  { %4446 = vmatprep.subr.mxu0 %v4809_v63 }
0x1590   :  { %v3181_v42 = vpop.permute.xlu0 %3180 }
0x1594   :  { %v3259_v44 = vpop.permute.xlu0 %3258 }
0x1597   :  { %v4614_v29 = vpop.eup %4613 }
0x1598   :  { %v2926_v31 = vsel %vm482_vm3, %v4614_v29, 0.0 }
0x1599   :  { %2927 = vadd.xlane.f32.xlu1 %v2926_v31 }
0x15aa   :  { %3260 = vrot.lane.b32.xlu1 %v5239_v30, %s4815_s18 }
0x15cb   :  { %v2906_v33 = vpop.f32.mrb[24].mxu1 }
0x15cc   :  { %v2911_v2 = vmul.f32 0.35355338, %v2906_v33  ;;  %v4430_v35 = vpop.f32.mrb[25].mxu1 }
0x15ce   :  { %v2913_v37 = vadd.f32 %v2911_v2, %v5049_v11  ;;  %v2318_v2 = vld [vmem:[#allocation13 + $0x30] sm:$0xff] }
0x15d0   :  { %v2917_v4 = vsel %vm482_vm3, %v2913_v37, -inf }
0x15d1   :  { %2918 = vmax.xlane.f32.xlu1 %v2917_v4 }
0x1626   :  { %v2928_v39 = vpop.xlane.xlu1 %2927 }
0x1627   :  { %4615 = vrcp.f32 %v2928_v39 }
0x162a   :  { %v3261_v43 = vpop.permute.xlu1 %3260 }
0x1631   :  { %v4616_v40 = vpop.eup %4615 }
0x1632   :  { %v5319_v41 = vmul.f32 %v4616_v40, %v4614_v29 }
0x1634   :  { %4434 = vmatmul.mubr.msk.f32.vlgmr.msra.gmra.mrb[30].mxu0 %vm482_vm3, %v5319_v41 }
0x1635   :  { %4447 = vmatpush3.xpose.msk.msra.mxu0 %vm482_vm3, %v3183_v38  ;;  %4448 = vmatprep.mubr.msk.f32.mxu0 %vm4810_vm2, %v4809_v63 }
0x1636   :  { %4451 = vmatprep.subr.mxu0 %v4809_v63 }
0x1638   :  { %4449 = vmatmul.mubr.msk.f32.vlgmr.msra.gmra.mrb[32].mxu0 %vm482_vm3, %v3181_v42 }
0x1639   :  { %4452 = vmatpush3.xpose.msk.msra.mxu0 %vm482_vm3, %v3261_v43  ;;  %4453 = vmatprep.mubr.msk.f32.mxu0 %vm4810_vm2, %v4809_v63 }
0x163a   :  { %4461 = vmatprep.subr.mxu0 %v4809_v63 }
0x163c   :  { %4454 = vmatmul.mubr.msk.f32.vlgmr.msra.gmra.mrb[34].mxu0 %vm482_vm3, %v3259_v44 }
0x163d   :  { %4463 = vmatprep.mubr.msk.f32.mxu0 %vm4810_vm2, %v4809_v63 }
0x165e   :  { %v2919_v46 = vpop.xlane.xlu1 %2918 }
0x165f   :  { %v2921_v48 = vsub.f32 %v2913_v37, %v2919_v46 }
0x1661   :  { %v2924_v49 = vmul.f32 1.442695, %v2921_v48 }
0x1663   :  { %4617 = vpow2.f32 %v2924_v49 }
0x166d   :  { %v4618_v50 = vpop.eup %4617 }
0x166e   :  { %v2929_v51 = vsel %vm482_vm3, %v4618_v50, 0.0 }
0x166f   :  { %2930 = vadd.xlane.f32.xlu0 %v2929_v51 }
0x1685   :  { %3022 = vrot.lane.b32.xlu0 %v5239_v30, %s4816_s21 }
0x1689   :  { %3448 = vrot.lane.b32.xlu0 %v5239_v30, %s4818_s23 }
0x168d   :  { %3608 = vrot.lane.b32.xlu0 %v5241_v32, %s4819_s25 }
0x1691   :  { %3686 = vrot.lane.b32.xlu0 %v5239_v30, %s4819_s25 }
0x1695   :  { %3606 = vrot.lane.b32.xlu0 %v5241_v32, %s4820_s26 }
0x16fc   :  { %v2931_v52 = vpop.xlane.xlu0 %2930 }
0x16fd   :  { %4619 = vrcp.f32 %v2931_v52 }
0x1700   :  { %v3023_v53 = vpop.permute.xlu0 %3022 }
0x1701   :  { %4437 = vmatpush3.msra.mxu1 %v3023_v53 }
0x1702   :  { %4441 = vmatprep.subr.mxu1 %v2317_v14 }
0x1704   :  { %v3449_v54 = vpop.permute.xlu0 %3448 }
0x1705   :  { %4462 = vmatpush3.msra.mxu0 %v3449_v54 }
0x1706   :  { %4471 = vmatprep.subr.mxu0 %v4809_v63 }
0x1707   :  { %v4620_v55 = vpop.eup %4619  ;;  %v3018_v57 = vpop.f32.mrb[30].mxu0 }
0x1708   :  { %v5347_v58 = vmul.f32 %v4620_v55, %v4618_v50  ;;  %v4435_v60 = vpop.f32.mrb[31].mxu0  ;;  %v3609_v37 = vpop.permute.xlu0 %3608 }
0x170a   :  { %4439 = vmatmul.mubr.msk.f32.vlgmr.msra.gmra.mrb[26].mxu1 %vm482_vm3, %v5347_v58 }
0x170b   :  { %4443 = vmatprep.mubr.msk.f32.mxu1 %vm482_vm3, %v3018_v57  ;;  %v3254_v61 = vpop.f32.mrb[32].mxu0  ;;  %4442 = vmatpush3.msra.mxu1 %v2317_v14 }
0x170c   :  { %v3336_v62 = vmul.f32 0.35355338, %v3254_v61  ;;  %v4450_v0 = vpop.f32.mrb[33].mxu0  ;;  %4456 = vmatprep.subr.mxu1 %v4809_v63  ;;  %v3687_v40 = vpop.permute.xlu0 %3686 }
0x170e   :  { %v3338_v1 = vadd.f32 %v3336_v62, %v5049_v11 }
0x170f   :  { %v3332_v3 = vpop.f32.mrb[34].mxu0 }
0x1710   :  { %v3337_v5 = vmul.f32 0.35355338, %v3332_v3  ;;  %v4455_v9 = vpop.f32.mrb[35].mxu0  ;;  %v3340_v10 = vsel %vm482_vm3, %v3338_v1, -inf  ;;  %v3607_v43 = vpop.permute.xlu0 %3606 }
0x1711   :  { %3341 = vmax.xlane.f32.xlu1 %v3340_v10 }
0x1712   :  { %v3339_v12 = vadd.f32 %v3337_v5, %v5049_v11 }
0x1714   :  { %v3343_v13 = vsel %vm482_vm3, %v3339_v12, -inf }
0x1715   :  { %3344 = vmax.xlane.f32.xlu1 %v3343_v13 }
0x179e   :  { %v3342_v15 = vpop.xlane.xlu1 %3341 }
0x179f   :  { %v3346_v16 = vsub.f32 %v3338_v1, %v3342_v15 }
0x17a1   :  { %v3348_v17 = vmul.f32 1.442695, %v3346_v16 }
0x17a2   :  { %v3345_v18 = vpop.xlane.xlu1 %3344 }
0x17a3   :  { %4621 = vpow2.f32 %v3348_v17  ;;  %v3347_v19 = vsub.f32 %v3339_v12, %v3345_v18 }
0x17a5   :  { %v3350_v20 = vmul.f32 1.442695, %v3347_v19 }
0x17a7   :  { %4623 = vpow2.f32 %v3350_v20 }
0x17ad   :  { %v4622_v21 = vpop.eup %4621 }
0x17ae   :  { %v3352_v22 = vsel %vm482_vm3, %v4622_v21, 0.0 }
0x17af   :  { %3353 = vadd.xlane.f32.xlu1 %v3352_v22 }
0x17b1   :  { %v4624_v24 = vpop.eup %4623 }
0x17b2   :  { %v3355_v25 = vsel %vm482_vm3, %v4624_v24, 0.0 }
0x17b3   :  { %3356 = vadd.xlane.f32.xlu1 %v3355_v25  ;;  %v2319_v25 = vld [vmem:[#allocation13 + $0x38] sm:$0xff] }
0x17c4   :  { %3373 = vrot.lane.b32.xlu1 %v5241_v32, %s4818_s23 }
0x17c8   :  { %3684 = vrot.lane.b32.xlu1 %v5239_v30, %s4820_s26 }
0x17dd   :  { %v3093_v26 = vpop.f32.mrb[26].mxu1 }
0x17de   :  { %v4440_v29 = vpop.f32.mrb[27].mxu1  ;;  %4444 = vmatmul.mubr.msk.f32.vlgmr.msra.gmra.mrb[22].mxu1 %vm482_vm3, %v3093_v26 }
0x17df   :  { %4458 = vmatprep.mubr.msk.f32.mxu1 %vm4810_vm2, %v4809_v63 }
0x183c   :  { %v3354_v31 = vpop.xlane.xlu1 %3353 }
0x183d   :  { %4625 = vrcp.f32 %v3354_v31 }
0x1840   :  { %v3357_v33 = vpop.xlane.xlu1 %3356 }
0x1841   :  { %4627 = vrcp.f32 %v3357_v33 }
0x1844   :  { %v3374_v35 = vpop.permute.xlu1 %3373 }
0x1845   :  { %4457 = vmatpush3.msra.mxu1 %v3374_v35  ;;  %v4113_v35 = vld [vmem:[%s5515_s12 + $0x1] ss:$0 sm:$0xff] }
0x1846   :  { %4466 = vmatprep.subr.mxu1 %v2318_v2 }
0x1847   :  { %v4626_v4 = vpop.eup %4625 }
0x1848   :  { %v5366_v38 = vmul.f32 %v4626_v4, %v4622_v21  ;;  %v3685_v50 = vpop.permute.xlu1 %3684 }
0x184a   :  { %4459 = vmatmul.mubr.msk.f32.vlgmr.msra.gmra.mrb[28].mxu1 %vm482_vm3, %v5366_v38 }
0x184b   :  { %v4628_v39 = vpop.eup %4627  ;;  %4467 = vmatpush3.msra.mxu1 %v2318_v2 }
0x184c   :  { %v3361_v42 = vmul.f32 %v4628_v39, %v4624_v24  ;;  %4476 = vmatprep.subr.mxu1 %v4809_v63 }
0x184e   :  { %4464 = vmatmul.mubr.msk.f32.vlgmr.msra.gmra.mrb[36].mxu0 %vm482_vm3, %v3361_v42 }
0x184f   :  { %4472 = vmatpush3.xpose.msk.msra.mxu0 %vm482_vm3, %v3609_v37  ;;  %4473 = vmatprep.mubr.msk.f32.mxu0 %vm4810_vm2, %v4809_v63  ;;  %v2329_v37 = vadd.f32 %v5213_v45, %v4113_v35 }
0x1850   :  { %4481 = vmatprep.subr.mxu0 %v4809_v63 }
0x1852   :  { %4474 = vmatmul.mubr.msk.f32.vlgmr.msra.gmra.mrb[38].mxu0 %vm482_vm3, %v3607_v43 }
0x1853   :  { %4483 = vmatprep.mubr.msk.f32.mxu0 %vm4810_vm2, %v4809_v63 }
0x191d   :  { %v3444_v44 = vpop.f32.mrb[28].mxu1 }
0x191e   :  { %v4460_v46 = vpop.f32.mrb[29].mxu1  ;;  %4468 = vmatprep.mubr.msk.f32.mxu1 %vm482_vm3, %v3444_v44 }
0x1921   :  { %v3519_v48 = vpop.f32.mrb[36].mxu0 }
0x1922   :  { %v4465_v49 = vpop.f32.mrb[37].mxu0  ;;  %4469 = vmatmul.mubr.msk.f32.vlgmr.msra.gmra.mrb[22].mxu1 %vm482_vm3, %v3519_v48 }
0x1923   :  { %4477 = vmatpush3.xpose.msk.msra.mxu1 %vm482_vm3, %v3687_v40  ;;  %4478 = vmatprep.mubr.msk.f32.mxu1 %vm4810_vm2, %v4809_v63 }
0x1924   :  { %4486 = vmatprep.subr.mxu1 %v4809_v63 }
0x1925   :  { %v3680_v51 = vpop.f32.mrb[38].mxu0 }
0x1926   :  { %v3762_v52 = vmul.f32 0.35355338, %v3680_v51  ;;  %v4475_v53 = vpop.f32.mrb[39].mxu0  ;;  %4479 = vmatmul.mubr.msk.f32.vlgmr.msra.gmra.mrb[30].mxu1 %vm482_vm3, %v3685_v50 }
0x1927   :  { %4488 = vmatprep.mubr.msk.f32.mxu1 %vm4810_vm2, %v4809_v63 }
0x1928   :  { %v3764_v54 = vadd.f32 %v3762_v52, %v5049_v11 }
0x192a   :  { %v3766_v55 = vsel %vm482_vm3, %v3764_v54, -inf }
0x192b   :  { %3767 = vmax.xlane.f32.xlu0 %v3766_v55 }
0x19b8   :  { %v3768_v57 = vpop.xlane.xlu0 %3767 }
0x19b9   :  { %v3772_v60 = vsub.f32 %v3764_v54, %v3768_v57 }
0x19bb   :  { %v3774_v61 = vmul.f32 1.442695, %v3772_v60 }
0x19bd   :  { %4629 = vpow2.f32 %v3774_v61 }
0x19c7   :  { %v4630_v62 = vpop.eup %4629 }
0x19c8   :  { %v3778_v0 = vsel %vm482_vm3, %v4630_v62, 0.0 }
0x19c9   :  { %3779 = vadd.xlane.f32.xlu0 %v3778_v0 }
0x19f9   :  { %v3758_v1 = vpop.f32.mrb[30].mxu1 }
0x19fa   :  { %v3763_v3 = vmul.f32 0.35355338, %v3758_v1  ;;  %v4480_v5 = vpop.f32.mrb[31].mxu1 }
0x19fc   :  { %v3765_v9 = vadd.f32 %v3763_v3, %v5049_v11 }
0x19fe   :  { %v3769_v63 = vsel %vm482_vm3, %v3765_v9, -inf }
0x19ff   :  { %3770 = vmax.xlane.f32.xlu1 %v3769_v63 }
0x1a10   :  { %3874 = vrot.lane.b32.xlu1 %v5239_v30, %s4821_s5 }
0x1a14   :  { %1081 = vrot.lane.b32.xlu1 %v5113_v8, %s4805_s16 }
0x1a18   :  { %1083 = vrot.lane.b32.xlu1 %v5141_v23, %s4805_s16 }
0x1a1c   :  { %1509 = vrot.lane.b32.xlu1 %v5164_v59, %s4822_s8 }
0x1a20   :  { %1935 = vrot.lane.b32.xlu1 %v5199_v36, %s4823_s10 }
0x1a24   :  { %2514 = vrot.lane.b32.xlu1 %v5280_v6, %s4824_s29 }
0x1a28   :  { %2940 = vrot.lane.b32.xlu1 %v5347_v58, %s4821_s5 }
0x1a2c   :  { %3366 = vrot.lane.b32.xlu1 %v3361_v42, %s4818_s23 }
0x1a56   :  { %v3780_v16 = vpop.xlane.xlu0 %3779 }
0x1a8c   :  { %v3771_v11 = vpop.xlane.xlu1 %3770 }
0x1a8d   :  { %v3773_v8 = vsub.f32 %v3765_v9, %v3771_v11 }
0x1a8f   :  { %v3776_v23 = vmul.f32 1.442695, %v3773_v8 }
0x1a90   :  { %v3875_v30 = vpop.permute.xlu1 %3874 }
0x1a91   :  { %4631 = vpow2.f32 %v3776_v23  ;;  %4487 = vmatpush3.msra.mxu1 %v3875_v30 }
0x1a92   :  { %4633 = vrcp.f32 %v3780_v16  ;;  %4491 = vmatprep.subr.mxu1 %v2319_v25 }
0x1a94   :  { %v1082_v59 = vpop.permute.xlu1 %1081 }
0x1a95   :  { %1088 = vst.msk [vmem:[%s5517_s14] sm:$0xff] %vm1087_vm5, %v1082_v59 }
0x1a98   :  { %v1084_v36 = vpop.permute.xlu1 %1083 }
0x1a99   :  { %1089 = vst.msk [vmem:[%s5517_s14 + $0x8] sm:$0xff] %vm1087_vm5, %v1084_v36 }
0x1a9b   :  { %v4632_v6 = vpop.eup %4631 }
0x1a9c   :  { %v1510_v58 = vpop.permute.xlu1 %1509  ;;  %v3781_v10 = vsel %vm482_vm3, %v4632_v6, 0.0  ;;  %v4634_v17 = vpop.eup %4633 }
0x1a9d   :  { %1515 = vst.msk [vmem:[%s5517_s14 + $0x8] sm:$0xff] %vm1513_vm6, %v1510_v58  ;;  %3782 = vadd.xlane.f32.xlu0 %v3781_v10  ;;  %v3786_v18 = vmul.f32 %v4634_v17, %v4630_v62 }
0x1aa0   :  { %v1936_v12 = vpop.permute.xlu1 %1935 }
0x1aa1   :  { %1941 = vst.msk [vmem:[%s5517_s14 + $0x8] sm:$0xff] %vm1939_vm7, %v1936_v12 }
0x1aa4   :  { %v2515_v13 = vpop.permute.xlu1 %2514 }
0x1aa5   :  { %2520 = vst.msk [vmem:[%s5517_s14 + $0x8] sm:$0xff] %vm2518_vm8, %v2515_v13 }
0x1aa8   :  { %v2941_v14 = vpop.permute.xlu1 %2940 }
0x1aa9   :  { %2946 = vst.msk [vmem:[%s5517_s14 + $0x8] sm:$0xff] %vm2944_vm9, %v2941_v14 }
0x1aac   :  { %v3367_v15 = vpop.permute.xlu1 %3366 }
0x1aad   :  { %3372 = vst.msk [vmem:[%s5517_s14 + $0x8] sm:$0xff] %vm3370_vm10, %v3367_v15 }
0x1ab3   :  { %3799 = vrot.lane.b32.xlu0 %v5241_v32, %s4821_s5 }
0x1ab7   :  { %1507 = vrot.lane.b32.xlu0 %v5160_v56, %s4822_s8 }
0x1abb   :  { %1933 = vrot.lane.b32.xlu0 %v5195_v34, %s4823_s10 }
0x1abf   :  { %2512 = vrot.lane.b32.xlu0 %v5282_v7, %s4824_s29 }
0x1ac3   :  { %2938 = vrot.lane.b32.xlu0 %v5319_v41, %s4821_s5 }
0x1ac7   :  { %3364 = vrot.lane.b32.xlu0 %v5366_v38, %s4818_s23  ;;  %v2328_v38 = vadd.f32 %v5215_v47, %v4113_v35 }
0x1acb   :  { %3790 = vrot.lane.b32.xlu0 %v3786_v18, %s4816_s21 }
0x1b2a   :  { %v3783_v32 = vpop.xlane.xlu0 %3782 }
0x1b2b   :  { %4635 = vrcp.f32 %v3783_v32 }
0x1b2e   :  { %v3800_v56 = vpop.permute.xlu0 %3799 }
0x1b2f   :  { %4482 = vmatpush3.msra.mxu0 %v3800_v56 }
0x1b30   :  { %4484 = vmatmul.mubr.msk.f32.vlgmr.msra.gmra.mrb[40].mxu0 %vm482_vm3, %v3786_v18 }
0x1b32   :  { %v1508_v34 = vpop.permute.xlu0 %1507 }
0x1b33   :  { %1514 = vst.msk [vmem:[%s5517_s14] sm:$0xff] %vm1513_vm6, %v1508_v34 }
0x1b35   :  { %v4636_v7 = vpop.eup %4635 }
0x1b36   :  { %v1934_v41 = vpop.permute.xlu0 %1933  ;;  %v3787_v19 = vmul.f32 %v4636_v7, %v4632_v6 }
0x1b37   :  { %1940 = vst.msk [vmem:[%s5517_s14] sm:$0xff] %vm1939_vm7, %v1934_v41 }
0x1b38   :  { %3792 = vrot.lane.b32.xlu1 %v3787_v19, %s4816_s21  ;;  %4489 = vmatmul.mubr.msk.f32.vlgmr.msra.gmra.mrb[32].mxu1 %vm482_vm3, %v3787_v19 }
0x1b39   :  { %4492 = vmatpush3.msra.mxu1 %v2319_v25 }
0x1b3a   :  { %v2513_v20 = vpop.permute.xlu0 %2512 }
0x1b3b   :  { %2519 = vst.msk [vmem:[%s5517_s14] sm:$0xff] %vm2518_vm8, %v2513_v20 }
0x1b3e   :  { %v2939_v21 = vpop.permute.xlu0 %2938 }
0x1b3f   :  { %2945 = vst.msk [vmem:[%s5517_s14] sm:$0xff] %vm2944_vm9, %v2939_v21 }
0x1b42   :  { %v3365_v22 = vpop.permute.xlu0 %3364 }
0x1b43   :  { %3371 = vst.msk [vmem:[%s5517_s14] sm:$0xff] %vm3370_vm10, %v3365_v22 }
0x1b46   :  { %v3791_v24 = vpop.permute.xlu0 %3790 }
0x1b47   :  { %3797 = vst.msk [vmem:[%s5517_s14] sm:$0xff] %vm3796_vm11, %v3791_v24 }
0x1baa   :  { %v3793_v26 = vpop.permute.xlu1 %3792 }
0x1bab   :  { %3798 = vst.msk [vmem:[%s5517_s14 + $0x8] sm:$0xff] %vm3796_vm11, %v3793_v26  ;;  %s4825_s14 = smov [#allocation15]  }
0x1bac   :  { %s4041_s18 = sshll.u32 %s4825_s14, 4  ;;  %s4042_s18 = int_to_ptr.vmem [resolvable:$true] %s4041_s18 }
0x1bad   :  { %s4769_s12 = scalar_lea.vmem %s4042_s18, 256  ;;  %p4774_p7 = scmp.lt.s32.totalorder %s4042_s18, %s4042_s18 }
0x1bae   :  { %p4770_p6 = scmp.ne.s32.totalorder %s4042_s18, %s4769_s12  ;;  %p4775_p8 = scmp.lt.s32.totalorder %s4769_s12, %s4769_s12 }
0x1bb0   :  { %p4776_p9 = por %p4775_p8, %p4774_p7 }
0x1bb2   :  { %p4777_p10 = pnand %p4776_p9, %p4770_p6 }
0x1c03   :  { %v3870_v29 = vpop.f32.mrb[40].mxu0 }
0x1c04   :  { %v4485_v31 = vpop.f32.mrb[41].mxu0  ;;  %4493 = vmatprep.mubr.msk.f32.mxu1 %vm482_vm3, %v3870_v29 }
0x1c0b   :  { %v3945_v33 = vpop.f32.mrb[32].mxu1 }
0x1c0c   :  { %v4490_v2 = vpop.f32.mrb[33].mxu1  ;;  %4494 = vmatmul.mubr.msk.f32.vlgmr.msra.gmra.mrb[22].mxu1 %vm482_vm3, %v3945_v33 }
0x1cdf   :  { %v4495_v4 = vpop.f32.mrb[22].mxu1 }
0x1ce0   :  { %v4526_v39 = vadd.f32 %v4495_v4, %v2329_v37  ;;  %v4021_v40 = vpop.f32.mrb[23].mxu1 }
0x1ce1   :  { %v4527_v42 = vadd.f32 %v4021_v40, %v2328_v38 }
0x1ce2   :  { %v4033_v43 = vadd.f32 %v4526_v39, %v5001_v28 }
0x1ce3   :  { %v4032_v44 = vadd.f32 %v4527_v42, %v4999_v27 }
0x1ce4   :  { %4035 = vst.msk [vmem:[#allocation15 + $0x8] sm:$0xff] %vm241_vm1, %v4033_v43 }
0x1ce5   :  { %4034 = vst.msk [vmem:[#allocation15] sm:$0xff] %vm241_vm1, %v4032_v44 }
0x1ce6   :  { %4780 = shalt.err (!%p4777_p10)
}
0x1ce7   :  { %s4781_s9 = scalar_lea.hbm %s5516_s13, 256 }
0x1ce8   :  { %p4782_p11 = scmp.ne.s32.totalorder %s5516_s13, %s4781_s9  ;;  %p4785_p12 = scmp.lt.u32.totalorder %s4781_s9, %s5516_s13 }
0x1cea   :  { %p4787_p13 = pnand %p4785_p12, %p4782_p11 }
0x1cec   :  { %4790 = shalt.err (!%p4787_p13)
}
0x1ced   :  { %4047 = dma.vmem_to_hbm [thread:$0]  %s4042_s18, 256, %s5516_s13, [#allocation6], %s4804_s6, %s4804_s6, %s4805_s16  }
0x1cee   :  { %4799 = dma.done.wait [#allocation6], 256  }
0x1cef   :  { %4800 = vsyncadd [#allocation6], 4294967040 }
0x1cf0   :  { %4055 = vsyncpa [#allocation5], 1 }
0x1cf1   :  { %4056 = vsyncpa [#allocation8], 1 }
0x1cf2   :  { %4057 = vsyncpa [#allocation11], 1 }
0x1cf3   :  { %4058 = vsyncpa [#allocation14], 1 }
0x1cf4   :  { %4059 = vsyncpa [#allocation6], 1 }

</bundles_post_ra>
